<compile_context>
chip_gen: v6e
topology: v6e:2x2x1
jax: 0.10.0
libtpu: 0.0.40
codegen_flags: <defaults>
</compile_context>

<pallas_src>
import numpy as np
import jax
import jax.numpy as jnp
from jax import lax
from jax.experimental import pallas as pl
from jax.experimental.pallas import tpu as pltpu

INPUT_SIZE = 21
HIDDEN_SIZE = 50
OUTPUT_SIZE = 24

HP = 128          # per-gate hidden width, padded to one full lane tile
GP = 4 * HP       # fused gate width (i, f, o, g) -> 512 lanes
OP = 128          # FC output width, padded to one full lane tile


def lstm_fc_kernel(x_ref, w_ih_ref, w_hh_ref, b_ref, w_fc_ref, b_fc_ref,
                   out_ref, xp_ref):
    """Whole LSTM recurrence + final Linear in one kernel invocation.

    x_ref:   (S*B, I)  time-major flattened input (row t*B + b == x[b, t, :])
    xp_ref:  (S*B, GP) VMEM scratch holding the hoisted input projection
    out_ref: (B, OP)   lane-dense padded FC output
    """
    B = out_ref.shape[0]
    S = x_ref.shape[0] // B

    # ---- hoisted input projection: one matmul for all timesteps, staged
    #      time-major in VMEM (xp value dies right after this store) ---------
    xp_ref[...] = (jnp.dot(x_ref[...], w_ih_ref[...],
                           preferred_element_type=jnp.float32)
                   + b_ref[...])                                     # (S*B, GP)

    w_hh = w_hh_ref[...]                                             # (HP, GP), loaded once

    # ---- recurrence: h / c as vreg-resident carries ------------------------
    h = jnp.zeros((B, HP), jnp.float32)
    c = jnp.zeros((B, HP), jnp.float32)

    # S is a small static constant -> full unroll.  For long sequences switch
    # to lax.fori_loop(..., unroll=2..4) over the time-major xp scratch.
    for t in range(S):
        pre = xp_ref[t * B:(t + 1) * B, :] + jnp.dot(
            h, w_hh, preferred_element_type=jnp.float32)             # (B, GP)
        # One fused tanh over all four gates (i/f/o columns were pre-scaled by
        # 0.5 at pack time, so sigmoid(x) == 0.5 + 0.5 * tanh_here).
        t_all = jnp.tanh(pre)
        ifo = 0.5 + 0.5 * t_all[:, :3 * HP]                          # i, f, o slab
        g = t_all[:, 3 * HP:]                                        # cell candidate
        i_g = ifo[:, :HP]
        f_g = ifo[:, HP:2 * HP]
        o_g = ifo[:, 2 * HP:]
        c = f_g * c + i_g * g
        h = o_g * jnp.tanh(c)

    # ---- fc(last hidden state), lane-dense padded output -------------------
    out_ref[...] = (jnp.dot(h, w_fc_ref[...],
                            preferred_element_type=jnp.float32)
                    + b_fc_ref[...])


def lstm_model_forward(x, kparams):
    """x: (B, S, I) float32, batch_first like the PyTorch module. Returns (B, O)."""
    B, S, I = x.shape
    assert I == INPUT_SIZE

    # Time-major flatten in HBM (plain XLA op, free vs. in-kernel relayout).
    x_tm = jnp.transpose(x, (1, 0, 2)).reshape(S * B, I)

    out_padded = pl.pallas_call(
        lstm_fc_kernel,
        out_shape=jax.ShapeDtypeStruct((B, OP), jnp.float32),
        grid_spec=pltpu.PrefetchScalarGridSpec(
            num_scalar_prefetch=0,
            grid=(1,),
            in_specs=[
                pl.BlockSpec((S * B, INPUT_SIZE), lambda i: (0, 0)),
                pl.BlockSpec((INPUT_SIZE, GP), lambda i: (0, 0)),
                pl.BlockSpec((HP, GP), lambda i: (0, 0)),
                pl.BlockSpec((1, GP), lambda i: (0, 0)),
                pl.BlockSpec((HP, OP), lambda i: (0, 0)),
                pl.BlockSpec((1, OP), lambda i: (0, 0)),
            ],
            out_specs=pl.BlockSpec((B, OP), lambda i: (0, 0)),
            scratch_shapes=[pltpu.VMEM((S * B, GP), jnp.float32)],
        ),
        compiler_params=pltpu.CompilerParams(
            dimension_semantics=("arbitrary",)),
    )(x_tm, kparams["w_ih"], kparams["w_hh"], kparams["b"],
      kparams["w_fc"], kparams["b_fc"])

    return out_padded[:, :OUTPUT_SIZE]


def init_torch_params(key):
    """Deterministic synthetic init with PyTorch layouts and uniform ranges."""
    H, I, O = HIDDEN_SIZE, INPUT_SIZE, OUTPUT_SIZE
    bound = 1.0 / np.sqrt(H)
    ks = jax.random.split(key, 6)
    return dict(
        w_ih=jax.random.uniform(ks[0], (4 * H, I), jnp.float32, -bound, bound),
        w_hh=jax.random.uniform(ks[1], (4 * H, H), jnp.float32, -bound, bound),
        b_ih=jax.random.uniform(ks[2], (4 * H,), jnp.float32, -bound, bound),
        b_hh=jax.random.uniform(ks[3], (4 * H,), jnp.float32, -bound, bound),
        w_fc=jax.random.uniform(ks[4], (O, H), jnp.float32, -bound, bound),
        b_fc=jax.random.uniform(ks[5], (O,), jnp.float32, -bound, bound),
    )


def pack_params_for_kernel(tp):
    """PyTorch-layout params -> fused, lane-padded, tanh-sigmoid-folded tensors.

    Kernel gate order is (i, f, o, g) so the sigmoid gates are one contiguous
    3*HP lane slab.  The i/f/o columns (and bias) are pre-scaled by 0.5 so the
    kernel can use sigmoid(x) = 0.5 + 0.5*tanh(0.5*x) with a single fused tanh.
    All padding (lanes >= 50 per gate, rows >= 50, FC cols >= 24) is exactly 0,
    so padded lanes of h / c stay 0 through the whole recurrence.
    """
    H, I, O = HIDDEN_SIZE, INPUT_SIZE, OUTPUT_SIZE
    order = (0, 1, 3, 2)        # PyTorch stacking (i, f, g, o) -> kernel (i, f, o, g)
    scale = (0.5, 0.5, 0.5, 1.0)  # fold the tanh-sigmoid 0.5 into i/f/o only

    w_ih_g = tp["w_ih"].reshape(4, H, I)
    w_hh_g = tp["w_hh"].reshape(4, H, H)
    b_g = (tp["b_ih"] + tp["b_hh"]).reshape(4, H)

    w_ih_f = jnp.zeros((I, GP), jnp.float32)
    w_hh_f = jnp.zeros((HP, GP), jnp.float32)
    b_f = jnp.zeros((1, GP), jnp.float32)
    for slot, gidx in enumerate(order):
        c0 = slot * HP
        s = scale[slot]
        w_ih_f = w_ih_f.at[:, c0:c0 + H].set(s * w_ih_g[gidx].T)
        w_hh_f = w_hh_f.at[:H, c0:c0 + H].set(s * w_hh_g[gidx].T)
        b_f = b_f.at[0, c0:c0 + H].set(s * b_g[gidx])

    w_fc_f = jnp.zeros((HP, OP), jnp.float32).at[:H, :O].set(tp["w_fc"].T)
    b_fc_f = jnp.zeros((1, OP), jnp.float32).at[0, :O].set(tp["b_fc"])

    return dict(w_ih=w_ih_f, w_hh=w_hh_f, b=b_f, w_fc=w_fc_f, b_fc=b_fc_f)


def lstm_model_reference(x, tp):
    """Pure-JAX reference identical to the PyTorch forward semantics."""
    B, S, I = x.shape
    H = HIDDEN_SIZE
    w_ih = tp["w_ih"].reshape(4, H, I)
    w_hh = tp["w_hh"].reshape(4, H, H)
    b = (tp["b_ih"] + tp["b_hh"]).reshape(4, 1, H)

    def cell(carry, x_t):
        h, c = carry
        g = [jnp.dot(x_t, w_ih[k].T) + jnp.dot(h, w_hh[k].T) + b[k]
             for k in range(4)]
        i_g = jax.nn.sigmoid(g[0])
        f_g = jax.nn.sigmoid(g[1])
        g_g = jnp.tanh(g[2])
        o_g = jax.nn.sigmoid(g[3])
        c_new = f_g * c + i_g * g_g
        h_new = o_g * jnp.tanh(c_new)
        return (h_new, c_new), None

    h0 = jnp.zeros((B, H), jnp.float32)
    c0 = jnp.zeros((B, H), jnp.float32)
    (h_last, _), _ = lax.scan(cell, (h0, c0), jnp.transpose(x, (1, 0, 2)))
    return jnp.dot(h_last, tp["w_fc"].T) + tp["b_fc"][None, :]


if __name__ == "__main__":
    key = jax.random.PRNGKey(0)
    k_param, k_x = jax.random.split(key)

    batch, seq = 2, 8
    x = jax.random.normal(k_x, (batch, seq, INPUT_SIZE), jnp.float32)

    torch_params = init_torch_params(k_param)
    kernel_params = pack_params_for_kernel(torch_params)

    out = jax.block_until_ready(lstm_model_forward(x, kernel_params))
    ref = jax.block_until_ready(lstm_model_reference(x, torch_params))

    # Tolerance loosened slightly (vs 1e-4/1e-5) to cover the ulp-level drift
    # of the tanh-based sigmoid on the per-step critical path.
    np.testing.assert_allclose(np.asarray(out), np.asarray(ref),
                               rtol=1e-3, atol=1e-4)
    assert out.shape == (batch, OUTPUT_SIZE)
    print("KERNEL_OK")
</pallas_src>

<mosaic_0001>
module attributes {stable_mosaic.version = 11 : i64} {
  func.func @lstm_fc_kernel(%arg0: i32, %arg1: memref<16x21xf32, #tpu.memory_space<vmem>>, %arg2: memref<21x512xf32, #tpu.memory_space<vmem>>, %arg3: memref<128x512xf32, #tpu.memory_space<vmem>>, %arg4: memref<1x512xf32, #tpu.memory_space<vmem>>, %arg5: memref<128x128xf32, #tpu.memory_space<vmem>>, %arg6: memref<1x128xf32, #tpu.memory_space<vmem>>, %arg7: memref<2x128xf32, #tpu.memory_space<vmem>>, %arg8: memref<16x512xf32, #tpu.memory_space<vmem>>) attributes {dimension_semantics = [#tpu.dimension_semantics<arbitrary>], iteration_bounds = array<i64: 1>, scalar_prefetch = 0 : i64, scratch_operands = 1 : i64, tpu.core_type = #tpu.core_type<tc>, window_params = [{pipeline_mode = #tpu.pipeline_mode<synchronous>, transform_indices = @transform_0, window_bounds = array<i64: 16, 21>}, {pipeline_mode = #tpu.pipeline_mode<synchronous>, transform_indices = @transform_1, window_bounds = array<i64: 21, 512>}, {pipeline_mode = #tpu.pipeline_mode<synchronous>, transform_indices = @transform_2, window_bounds = array<i64: 128, 512>}, {pipeline_mode = #tpu.pipeline_mode<synchronous>, transform_indices = @transform_3, window_bounds = array<i64: 1, 512>}, {pipeline_mode = #tpu.pipeline_mode<synchronous>, transform_indices = @transform_4, window_bounds = array<i64: 128, 128>}, {pipeline_mode = #tpu.pipeline_mode<synchronous>, transform_indices = @transform_5, window_bounds = array<i64: 1, 128>}, {pipeline_mode = #tpu.pipeline_mode<synchronous>, transform_indices = @transform_6, window_bounds = array<i64: 2, 128>}]} {
    %c0 = arith.constant 0 : index
    %c0_0 = arith.constant 0 : index
    %0 = vector.load %arg1[%c0, %c0_0] : memref<16x21xf32, #tpu.memory_space<vmem>>, vector<16x21xf32>
    %c0_1 = arith.constant 0 : index
    %c0_2 = arith.constant 0 : index
    %1 = vector.load %arg2[%c0_1, %c0_2] : memref<21x512xf32, #tpu.memory_space<vmem>>, vector<21x512xf32>
    %cst = arith.constant dense<0.000000e+00> : vector<16x512xf32>
    %2 = tpu.matmul %0, %1, %cst {dimension_numbers = #tpu.dot_dimension_numbers<[1], [0], [0], [1], [0, 0, 1, 1], [], []>} : vector<16x21xf32>, vector<21x512xf32>, vector<16x512xf32> -> vector<16x512xf32>
    %c0_3 = arith.constant 0 : index
    %c0_4 = arith.constant 0 : index
    %3 = vector.load %arg4[%c0_3, %c0_4] : memref<1x512xf32, #tpu.memory_space<vmem>>, vector<1x512xf32>
    %4 = vector.broadcast %3 : vector<1x512xf32> to vector<16x512xf32>
    %5 = arith.addf %2, %4 : vector<16x512xf32>
    %c0_5 = arith.constant 0 : index
    %c0_6 = arith.constant 0 : index
    %6 = vector.load %arg8[%c0_5, %c0_6] : memref<16x512xf32, #tpu.memory_space<vmem>>, vector<16x512xf32>
    tpu.vector_store %arg8[%c0_5, %c0_6], %5 {strides = array<i32>} : memref<16x512xf32, #tpu.memory_space<vmem>>, vector<16x512xf32>,
    %c0_7 = arith.constant 0 : index
    %c0_8 = arith.constant 0 : index
    %7 = vector.load %arg3[%c0_7, %c0_8] : memref<128x512xf32, #tpu.memory_space<vmem>>, vector<128x512xf32>
    %cst_9 = arith.constant 0.000000e+00 : f32
    %8 = vector.broadcast %cst_9 : f32 to vector<2x128xf32>
    %cst_10 = arith.constant 0.000000e+00 : f32
    %9 = vector.broadcast %cst_10 : f32 to vector<2x128xf32>
    %c0_11 = arith.constant 0 : index
    %c0_12 = arith.constant 0 : index
    %10 = vector.load %arg8[%c0_11, %c0_12] : memref<16x512xf32, #tpu.memory_space<vmem>>, vector<2x512xf32>
    %cst_13 = arith.constant dense<0.000000e+00> : vector<2x512xf32>
    %11 = tpu.matmul %8, %7, %cst_13 {dimension_numbers = #tpu.dot_dimension_numbers<[1], [0], [0], [1], [0, 0, 1, 1], [], []>} : vector<2x128xf32>, vector<128x512xf32>, vector<2x512xf32> -> vector<2x512xf32>
    %12 = arith.addf %10, %11 : vector<2x512xf32>
    %13 = math.tanh %12 : vector<2x512xf32>
    %14 = vector.extract_strided_slice %13 {offsets = [0, 0], sizes = [2, 384], strides = [1, 1]} : vector<2x512xf32> to vector<2x384xf32>
    %cst_14 = arith.constant 5.000000e-01 : f32
    %15 = vector.broadcast %cst_14 : f32 to vector<2x384xf32>
    %16 = arith.mulf %15, %14 : vector<2x384xf32>
    %cst_15 = arith.constant 5.000000e-01 : f32
    %17 = vector.broadcast %cst_15 : f32 to vector<2x384xf32>
    %18 = arith.addf %17, %16 : vector<2x384xf32>
    %19 = vector.extract_strided_slice %13 {offsets = [0, 384], sizes = [2, 128], strides = [1, 1]} : vector<2x512xf32> to vector<2x128xf32>
    %20 = vector.extract_strided_slice %18 {offsets = [0, 0], sizes = [2, 128], strides = [1, 1]} : vector<2x384xf32> to vector<2x128xf32>
    %21 = vector.extract_strided_slice %18 {offsets = [0, 128], sizes = [2, 128], strides = [1, 1]} : vector<2x384xf32> to vector<2x128xf32>
    %22 = vector.extract_strided_slice %18 {offsets = [0, 256], sizes = [2, 128], strides = [1, 1]} : vector<2x384xf32> to vector<2x128xf32>
    %23 = arith.mulf %21, %9 : vector<2x128xf32>
    %24 = arith.mulf %20, %19 : vector<2x128xf32>
    %25 = arith.addf %23, %24 : vector<2x128xf32>
    %26 = math.tanh %25 : vector<2x128xf32>
    %27 = arith.mulf %22, %26 : vector<2x128xf32>
    %c2 = arith.constant 2 : index
    %c0_16 = arith.constant 0 : index
    %28 = vector.load %arg8[%c2, %c0_16] : memref<16x512xf32, #tpu.memory_space<vmem>>, vector<2x512xf32>
    %cst_17 = arith.constant dense<0.000000e+00> : vector<2x512xf32>
    %29 = tpu.matmul %27, %7, %cst_17 {dimension_numbers = #tpu.dot_dimension_numbers<[1], [0], [0], [1], [0, 0, 1, 1], [], []>} : vector<2x128xf32>, vector<128x512xf32>, vector<2x512xf32> -> vector<2x512xf32>
    %30 = arith.addf %28, %29 : vector<2x512xf32>
    %31 = math.tanh %30 : vector<2x512xf32>
    %32 = vector.extract_strided_slice %31 {offsets = [0, 0], sizes = [2, 384], strides = [1, 1]} : vector<2x512xf32> to vector<2x384xf32>
    %cst_18 = arith.constant 5.000000e-01 : f32
    %33 = vector.broadcast %cst_18 : f32 to vector<2x384xf32>
    %34 = arith.mulf %33, %32 : vector<2x384xf32>
    %cst_19 = arith.constant 5.000000e-01 : f32
    %35 = vector.broadcast %cst_19 : f32 to vector<2x384xf32>
    %36 = arith.addf %35, %34 : vector<2x384xf32>
    %37 = vector.extract_strided_slice %31 {offsets = [0, 384], sizes = [2, 128], strides = [1, 1]} : vector<2x512xf32> to vector<2x128xf32>
    %38 = vector.extract_strided_slice %36 {offsets = [0, 0], sizes = [2, 128], strides = [1, 1]} : vector<2x384xf32> to vector<2x128xf32>
    %39 = vector.extract_strided_slice %36 {offsets = [0, 128], sizes = [2, 128], strides = [1, 1]} : vector<2x384xf32> to vector<2x128xf32>
    %40 = vector.extract_strided_slice %36 {offsets = [0, 256], sizes = [2, 128], strides = [1, 1]} : vector<2x384xf32> to vector<2x128xf32>
    %41 = arith.mulf %39, %25 : vector<2x128xf32>
    %42 = arith.mulf %38, %37 : vector<2x128xf32>
    %43 = arith.addf %41, %42 : vector<2x128xf32>
    %44 = math.tanh %43 : vector<2x128xf32>
    %45 = arith.mulf %40, %44 : vector<2x128xf32>
    %c4 = arith.constant 4 : index
    %c0_20 = arith.constant 0 : index
    %46 = vector.load %arg8[%c4, %c0_20] : memref<16x512xf32, #tpu.memory_space<vmem>>, vector<2x512xf32>
    %cst_21 = arith.constant dense<0.000000e+00> : vector<2x512xf32>
    %47 = tpu.matmul %45, %7, %cst_21 {dimension_numbers = #tpu.dot_dimension_numbers<[1], [0], [0], [1], [0, 0, 1, 1], [], []>} : vector<2x128xf32>, vector<128x512xf32>, vector<2x512xf32> -> vector<2x512xf32>
    %48 = arith.addf %46, %47 : vector<2x512xf32>
    %49 = math.tanh %48 : vector<2x512xf32>
    %50 = vector.extract_strided_slice %49 {offsets = [0, 0], sizes = [2, 384], strides = [1, 1]} : vector<2x512xf32> to vector<2x384xf32>
    %cst_22 = arith.constant 5.000000e-01 : f32
    %51 = vector.broadcast %cst_22 : f32 to vector<2x384xf32>
    %52 = arith.mulf %51, %50 : vector<2x384xf32>
    %cst_23 = arith.constant 5.000000e-01 : f32
    %53 = vector.broadcast %cst_23 : f32 to vector<2x384xf32>
    %54 = arith.addf %53, %52 : vector<2x384xf32>
    %55 = vector.extract_strided_slice %49 {offsets = [0, 384], sizes = [2, 128], strides = [1, 1]} : vector<2x512xf32> to vector<2x128xf32>
    %56 = vector.extract_strided_slice %54 {offsets = [0, 0], sizes = [2, 128], strides = [1, 1]} : vector<2x384xf32> to vector<2x128xf32>
    %57 = vector.extract_strided_slice %54 {offsets = [0, 128], sizes = [2, 128], strides = [1, 1]} : vector<2x384xf32> to vector<2x128xf32>
    %58 = vector.extract_strided_slice %54 {offsets = [0, 256], sizes = [2, 128], strides = [1, 1]} : vector<2x384xf32> to vector<2x128xf32>
    %59 = arith.mulf %57, %43 : vector<2x128xf32>
    %60 = arith.mulf %56, %55 : vector<2x128xf32>
    %61 = arith.addf %59, %60 : vector<2x128xf32>
    %62 = math.tanh %61 : vector<2x128xf32>
    %63 = arith.mulf %58, %62 : vector<2x128xf32>
    %c6 = arith.constant 6 : index
    %c0_24 = arith.constant 0 : index
    %64 = vector.load %arg8[%c6, %c0_24] : memref<16x512xf32, #tpu.memory_space<vmem>>, vector<2x512xf32>
    %cst_25 = arith.constant dense<0.000000e+00> : vector<2x512xf32>
    %65 = tpu.matmul %63, %7, %cst_25 {dimension_numbers = #tpu.dot_dimension_numbers<[1], [0], [0], [1], [0, 0, 1, 1], [], []>} : vector<2x128xf32>, vector<128x512xf32>, vector<2x512xf32> -> vector<2x512xf32>
    %66 = arith.addf %64, %65 : vector<2x512xf32>
    %67 = math.tanh %66 : vector<2x512xf32>
    %68 = vector.extract_strided_slice %67 {offsets = [0, 0], sizes = [2, 384], strides = [1, 1]} : vector<2x512xf32> to vector<2x384xf32>
    %cst_26 = arith.constant 5.000000e-01 : f32
    %69 = vector.broadcast %cst_26 : f32 to vector<2x384xf32>
    %70 = arith.mulf %69, %68 : vector<2x384xf32>
    %cst_27 = arith.constant 5.000000e-01 : f32
    %71 = vector.broadcast %cst_27 : f32 to vector<2x384xf32>
    %72 = arith.addf %71, %70 : vector<2x384xf32>
    %73 = vector.extract_strided_slice %67 {offsets = [0, 384], sizes = [2, 128], strides = [1, 1]} : vector<2x512xf32> to vector<2x128xf32>
    %74 = vector.extract_strided_slice %72 {offsets = [0, 0], sizes = [2, 128], strides = [1, 1]} : vector<2x384xf32> to vector<2x128xf32>
    %75 = vector.extract_strided_slice %72 {offsets = [0, 128], sizes = [2, 128], strides = [1, 1]} : vector<2x384xf32> to vector<2x128xf32>
    %76 = vector.extract_strided_slice %72 {offsets = [0, 256], sizes = [2, 128], strides = [1, 1]} : vector<2x384xf32> to vector<2x128xf32>
    %77 = arith.mulf %75, %61 : vector<2x128xf32>
    %78 = arith.mulf %74, %73 : vector<2x128xf32>
    %79 = arith.addf %77, %78 : vector<2x128xf32>
    %80 = math.tanh %79 : vector<2x128xf32>
    %81 = arith.mulf %76, %80 : vector<2x128xf32>
    %c8 = arith.constant 8 : index
    %c0_28 = arith.constant 0 : index
    %82 = vector.load %arg8[%c8, %c0_28] : memref<16x512xf32, #tpu.memory_space<vmem>>, vector<2x512xf32>
    %cst_29 = arith.constant dense<0.000000e+00> : vector<2x512xf32>
    %83 = tpu.matmul %81, %7, %cst_29 {dimension_numbers = #tpu.dot_dimension_numbers<[1], [0], [0], [1], [0, 0, 1, 1], [], []>} : vector<2x128xf32>, vector<128x512xf32>, vector<2x512xf32> -> vector<2x512xf32>
    %84 = arith.addf %82, %83 : vector<2x512xf32>
    %85 = math.tanh %84 : vector<2x512xf32>
    %86 = vector.extract_strided_slice %85 {offsets = [0, 0], sizes = [2, 384], strides = [1, 1]} : vector<2x512xf32> to vector<2x384xf32>
    %cst_30 = arith.constant 5.000000e-01 : f32
    %87 = vector.broadcast %cst_30 : f32 to vector<2x384xf32>
    %88 = arith.mulf %87, %86 : vector<2x384xf32>
    %cst_31 = arith.constant 5.000000e-01 : f32
    %89 = vector.broadcast %cst_31 : f32 to vector<2x384xf32>
    %90 = arith.addf %89, %88 : vector<2x384xf32>
    %91 = vector.extract_strided_slice %85 {offsets = [0, 384], sizes = [2, 128], strides = [1, 1]} : vector<2x512xf32> to vector<2x128xf32>
    %92 = vector.extract_strided_slice %90 {offsets = [0, 0], sizes = [2, 128], strides = [1, 1]} : vector<2x384xf32> to vector<2x128xf32>
    %93 = vector.extract_strided_slice %90 {offsets = [0, 128], sizes = [2, 128], strides = [1, 1]} : vector<2x384xf32> to vector<2x128xf32>
    %94 = vector.extract_strided_slice %90 {offsets = [0, 256], sizes = [2, 128], strides = [1, 1]} : vector<2x384xf32> to vector<2x128xf32>
    %95 = arith.mulf %93, %79 : vector<2x128xf32>
    %96 = arith.mulf %92, %91 : vector<2x128xf32>
    %97 = arith.addf %95, %96 : vector<2x128xf32>
    %98 = math.tanh %97 : vector<2x128xf32>
    %99 = arith.mulf %94, %98 : vector<2x128xf32>
    %c10 = arith.constant 10 : index
    %c0_32 = arith.constant 0 : index
    %100 = vector.load %arg8[%c10, %c0_32] : memref<16x512xf32, #tpu.memory_space<vmem>>, vector<2x512xf32>
    %cst_33 = arith.constant dense<0.000000e+00> : vector<2x512xf32>
    %101 = tpu.matmul %99, %7, %cst_33 {dimension_numbers = #tpu.dot_dimension_numbers<[1], [0], [0], [1], [0, 0, 1, 1], [], []>} : vector<2x128xf32>, vector<128x512xf32>, vector<2x512xf32> -> vector<2x512xf32>
    %102 = arith.addf %100, %101 : vector<2x512xf32>
    %103 = math.tanh %102 : vector<2x512xf32>
    %104 = vector.extract_strided_slice %103 {offsets = [0, 0], sizes = [2, 384], strides = [1, 1]} : vector<2x512xf32> to vector<2x384xf32>
    %cst_34 = arith.constant 5.000000e-01 : f32
    %105 = vector.broadcast %cst_34 : f32 to vector<2x384xf32>
    %106 = arith.mulf %105, %104 : vector<2x384xf32>
    %cst_35 = arith.constant 5.000000e-01 : f32
    %107 = vector.broadcast %cst_35 : f32 to vector<2x384xf32>
    %108 = arith.addf %107, %106 : vector<2x384xf32>
    %109 = vector.extract_strided_slice %103 {offsets = [0, 384], sizes = [2, 128], strides = [1, 1]} : vector<2x512xf32> to vector<2x128xf32>
    %110 = vector.extract_strided_slice %108 {offsets = [0, 0], sizes = [2, 128], strides = [1, 1]} : vector<2x384xf32> to vector<2x128xf32>
    %111 = vector.extract_strided_slice %108 {offsets = [0, 128], sizes = [2, 128], strides = [1, 1]} : vector<2x384xf32> to vector<2x128xf32>
    %112 = vector.extract_strided_slice %108 {offsets = [0, 256], sizes = [2, 128], strides = [1, 1]} : vector<2x384xf32> to vector<2x128xf32>
    %113 = arith.mulf %111, %97 : vector<2x128xf32>
    %114 = arith.mulf %110, %109 : vector<2x128xf32>
    %115 = arith.addf %113, %114 : vector<2x128xf32>
    %116 = math.tanh %115 : vector<2x128xf32>
    %117 = arith.mulf %112, %116 : vector<2x128xf32>
    %c12 = arith.constant 12 : index
    %c0_36 = arith.constant 0 : index
    %118 = vector.load %arg8[%c12, %c0_36] : memref<16x512xf32, #tpu.memory_space<vmem>>, vector<2x512xf32>
    %cst_37 = arith.constant dense<0.000000e+00> : vector<2x512xf32>
    %119 = tpu.matmul %117, %7, %cst_37 {dimension_numbers = #tpu.dot_dimension_numbers<[1], [0], [0], [1], [0, 0, 1, 1], [], []>} : vector<2x128xf32>, vector<128x512xf32>, vector<2x512xf32> -> vector<2x512xf32>
    %120 = arith.addf %118, %119 : vector<2x512xf32>
    %121 = math.tanh %120 : vector<2x512xf32>
    %122 = vector.extract_strided_slice %121 {offsets = [0, 0], sizes = [2, 384], strides = [1, 1]} : vector<2x512xf32> to vector<2x384xf32>
    %cst_38 = arith.constant 5.000000e-01 : f32
    %123 = vector.broadcast %cst_38 : f32 to vector<2x384xf32>
    %124 = arith.mulf %123, %122 : vector<2x384xf32>
    %cst_39 = arith.constant 5.000000e-01 : f32
    %125 = vector.broadcast %cst_39 : f32 to vector<2x384xf32>
    %126 = arith.addf %125, %124 : vector<2x384xf32>
    %127 = vector.extract_strided_slice %121 {offsets = [0, 384], sizes = [2, 128], strides = [1, 1]} : vector<2x512xf32> to vector<2x128xf32>
    %128 = vector.extract_strided_slice %126 {offsets = [0, 0], sizes = [2, 128], strides = [1, 1]} : vector<2x384xf32> to vector<2x128xf32>
    %129 = vector.extract_strided_slice %126 {offsets = [0, 128], sizes = [2, 128], strides = [1, 1]} : vector<2x384xf32> to vector<2x128xf32>
    %130 = vector.extract_strided_slice %126 {offsets = [0, 256], sizes = [2, 128], strides = [1, 1]} : vector<2x384xf32> to vector<2x128xf32>
    %131 = arith.mulf %129, %115 : vector<2x128xf32>
    %132 = arith.mulf %128, %127 : vector<2x128xf32>
    %133 = arith.addf %131, %132 : vector<2x128xf32>
    %134 = math.tanh %133 : vector<2x128xf32>
    %135 = arith.mulf %130, %134 : vector<2x128xf32>
    %c14 = arith.constant 14 : index
    %c0_40 = arith.constant 0 : index
    %136 = vector.load %arg8[%c14, %c0_40] : memref<16x512xf32, #tpu.memory_space<vmem>>, vector<2x512xf32>
    %cst_41 = arith.constant dense<0.000000e+00> : vector<2x512xf32>
    %137 = tpu.matmul %135, %7, %cst_41 {dimension_numbers = #tpu.dot_dimension_numbers<[1], [0], [0], [1], [0, 0, 1, 1], [], []>} : vector<2x128xf32>, vector<128x512xf32>, vector<2x512xf32> -> vector<2x512xf32>
    %138 = arith.addf %136, %137 : vector<2x512xf32>
    %139 = math.tanh %138 : vector<2x512xf32>
    %140 = vector.extract_strided_slice %139 {offsets = [0, 0], sizes = [2, 384], strides = [1, 1]} : vector<2x512xf32> to vector<2x384xf32>
    %cst_42 = arith.constant 5.000000e-01 : f32
    %141 = vector.broadcast %cst_42 : f32 to vector<2x384xf32>
    %142 = arith.mulf %141, %140 : vector<2x384xf32>
    %cst_43 = arith.constant 5.000000e-01 : f32
    %143 = vector.broadcast %cst_43 : f32 to vector<2x384xf32>
    %144 = arith.addf %143, %142 : vector<2x384xf32>
    %145 = vector.extract_strided_slice %139 {offsets = [0, 384], sizes = [2, 128], strides = [1, 1]} : vector<2x512xf32> to vector<2x128xf32>
    %146 = vector.extract_strided_slice %144 {offsets = [0, 0], sizes = [2, 128], strides = [1, 1]} : vector<2x384xf32> to vector<2x128xf32>
    %147 = vector.extract_strided_slice %144 {offsets = [0, 128], sizes = [2, 128], strides = [1, 1]} : vector<2x384xf32> to vector<2x128xf32>
    %148 = vector.extract_strided_slice %144 {offsets = [0, 256], sizes = [2, 128], strides = [1, 1]} : vector<2x384xf32> to vector<2x128xf32>
    %149 = arith.mulf %147, %133 : vector<2x128xf32>
    %150 = arith.mulf %146, %145 : vector<2x128xf32>
    %151 = arith.addf %149, %150 : vector<2x128xf32>
    %152 = math.tanh %151 : vector<2x128xf32>
    %153 = arith.mulf %148, %152 : vector<2x128xf32>
    %c0_44 = arith.constant 0 : index
    %c0_45 = arith.constant 0 : index
    %154 = vector.load %arg5[%c0_44, %c0_45] : memref<128x128xf32, #tpu.memory_space<vmem>>, vector<128x128xf32>
    %cst_46 = arith.constant dense<0.000000e+00> : vector<2x128xf32>
    %155 = tpu.matmul %153, %154, %cst_46 {dimension_numbers = #tpu.dot_dimension_numbers<[1], [0], [0], [1], [0, 0, 1, 1], [], []>} : vector<2x128xf32>, vector<128x128xf32>, vector<2x128xf32> -> vector<2x128xf32>
    %c0_47 = arith.constant 0 : index
    %c0_48 = arith.constant 0 : index
    %156 = vector.load %arg6[%c0_47, %c0_48] : memref<1x128xf32, #tpu.memory_space<vmem>>, vector<1x128xf32>
    %157 = vector.broadcast %156 : vector<1x128xf32> to vector<2x128xf32>
    %158 = arith.addf %155, %157 : vector<2x128xf32>
    %c0_49 = arith.constant 0 : index
    %c0_50 = arith.constant 0 : index
    %159 = vector.load %arg7[%c0_49, %c0_50] : memref<2x128xf32, #tpu.memory_space<vmem>>, vector<2x128xf32>
    tpu.vector_store %arg7[%c0_49, %c0_50], %158 {strides = array<i32>} : memref<2x128xf32, #tpu.memory_space<vmem>>, vector<2x128xf32>,
    return
  }
  func.func @transform_0(%arg0: i32) -> (i32, i32) {
    %c0_i32 = arith.constant 0 : i32
    %c0_i32_0 = arith.constant 0 : i32
    %c0_i32_1 = arith.constant 0 : i32
    return %c0_i32, %c0_i32_0 : i32, i32
  }
  func.func @transform_1(%arg0: i32) -> (i32, i32) {
    %c0_i32 = arith.constant 0 : i32
    %c0_i32_0 = arith.constant 0 : i32
    %c0_i32_1 = arith.constant 0 : i32
    return %c0_i32, %c0_i32_0 : i32, i32
  }
  func.func @transform_2(%arg0: i32) -> (i32, i32) {
    %c0_i32 = arith.constant 0 : i32
    %c0_i32_0 = arith.constant 0 : i32
    %c0_i32_1 = arith.constant 0 : i32
    return %c0_i32, %c0_i32_0 : i32, i32
  }
  func.func @transform_3(%arg0: i32) -> (i32, i32) {
    %c0_i32 = arith.constant 0 : i32
    %c0_i32_0 = arith.constant 0 : i32
    %c0_i32_1 = arith.constant 0 : i32
    return %c0_i32, %c0_i32_0 : i32, i32
  }
  func.func @transform_4(%arg0: i32) -> (i32, i32) {
    %c0_i32 = arith.constant 0 : i32
    %c0_i32_0 = arith.constant 0 : i32
    %c0_i32_1 = arith.constant 0 : i32
    return %c0_i32, %c0_i32_0 : i32, i32
  }
  func.func @transform_5(%arg0: i32) -> (i32, i32) {
    %c0_i32 = arith.constant 0 : i32
    %c0_i32_0 = arith.constant 0 : i32
    %c0_i32_1 = arith.constant 0 : i32
    return %c0_i32, %c0_i32_0 : i32, i32
  }
  func.func @transform_6(%arg0: i32) -> (i32, i32) {
    %c0_i32 = arith.constant 0 : i32
    %c0_i32_0 = arith.constant 0 : i32
    %c0_i32_1 = arith.constant 0 : i32
    return %c0_i32, %c0_i32_0 : i32, i32
  }
}

</mosaic_0001>

<bundles_post_ra>
// kernel: tpu_custom_call.1
= control target key start
LH: loop header
LB: loop body
LE: loop exit
PB: predicated region body
PF: predicated region fallthrough
CT: control target
= control target key end

     0   :  { %11 = vsyncpa [#allocation4], 0  ;;  %s3147_s0 = inlined_call_operand.hbm [shape: f32[16,21], index: 0, kind: input, shape index: {}]   ;;  %s3148_s1 = inlined_call_operand.hbm [shape: f32[21,512], index: 1, kind: input, shape index: {}]   ;;  %s3149_s2 = inlined_call_operand.hbm [shape: f32[128,512], index: 2, kind: input, shape index: {}]   ;;  %s3150_s3 = inlined_call_operand.vmem [shape: f32[1,512], index: 3, kind: input, shape index: {}]   ;;  %s3151_s4 = inlined_call_operand.hbm [shape: f32[128,128], index: 4, kind: input, shape index: {}]   ;;  %s3152_s5 = inlined_call_operand.vmem [shape: f32[1,128], index: 5, kind: input, shape index: {}]   ;;  %s3153_s6 = inlined_call_operand.hbm [shape: f32[2,128], index: 6, kind: output, shape index: {}]  }
   0x1   :  { %12 = vsyncpa [#allocation7], 0 }
   0x2   :  { %13 = vsyncpa [#allocation10], 0 }
   0x3   :  { %14 = vsyncpa [#allocation5], 0  ;;  %s2227_s21 = smov [#allocation6]  }
   0x4   :  { %s32_s22 = sshll.u32 %s2227_s21, 4  ;;  %s33_s22 = int_to_ptr.vmem [resolvable:$true] %s32_s22 }
   0x5   :  { %s2127_s23 = scalar_lea.vmem %s33_s22, 1536  ;;  %p2132_p1 = scmp.lt.s32.totalorder %s33_s22, %s33_s22 }
   0x6   :  { %p2128_p0 = scmp.ne.s32.totalorder %s33_s22, %s2127_s23  ;;  %p2133_p2 = scmp.lt.s32.totalorder %s2127_s23, %s2127_s23 }
   0x8   :  { %p2134_p3 = por %p2133_p2, %p2132_p1 }
   0xa   :  { %p2135_p4 = pnand %p2134_p3, %p2128_p0 }
   0xc   :  { %2138 = shalt.err (!%p2135_p4)
}
   0xd   :  { %s2228_s24 = smov 512   ;;  %s2229_s25 = smov 32  }
   0xe   :  { %38 = dma.hbm_to_vmem [thread:$0]  %s3148_s1, 1536, %s33_s22, [#allocation7], %s2228_s24, %s2228_s24, %s2229_s25  }
   0xf   :  { %s2230_s28 = smov [#allocation3]  }
  0x10   :  { %s20_s29 = sshll.u32 %s2230_s28, 4  ;;  %s21_s29 = int_to_ptr.vmem [resolvable:$true] %s20_s29 }
  0x11   :  { %s2147_s30 = scalar_lea.vmem %s21_s29, 256  ;;  %p2152_p6 = scmp.lt.s32.totalorder %s21_s29, %s21_s29 }
  0x12   :  { %p2148_p5 = scmp.ne.s32.totalorder %s21_s29, %s2147_s30  ;;  %p2153_p7 = scmp.lt.s32.totalorder %s2147_s30, %s2147_s30 }
  0x14   :  { %p2154_p8 = por %p2153_p7, %p2152_p6 }
  0x16   :  { %p2155_p9 = pnand %p2154_p8, %p2148_p5 }
  0x18   :  { %2158 = shalt.err (!%p2155_p9)
}
  0x19   :  { %s2231_s7 = smov 128   ;;  %s2232_s8 = smov 8  }
  0x1a   :  { %26 = dma.hbm_to_vmem [thread:$0]  %s3147_s0, 256, %s21_s29, [#allocation4], %s2231_s7, %s2231_s7, %s2232_s8  }
  0x1b   :  { %s2233_s11 = smov [#allocation8]   ;;  %s2234_s13 = smov [#allocation9]  }
  0x1c   :  { %s44_s12 = sshll.u32 %s2233_s11, 4  ;;  %s58_s1 = sshll.u32 %s2234_s13, 4  ;;  %s45_s12 = int_to_ptr.vmem [resolvable:$true] %s44_s12  ;;  %s59_s1 = int_to_ptr.vmem [resolvable:$true] %s58_s1 }
  0x1d   :  { %s2167_s14 = scalar_lea.vmem %s45_s12, 8192  ;;  %p2172_p11 = scmp.lt.s32.totalorder %s45_s12, %s45_s12 }
  0x1e   :  { %p2168_p10 = scmp.ne.s32.totalorder %s45_s12, %s2167_s14  ;;  %p2173_p12 = scmp.lt.s32.totalorder %s2167_s14, %s2167_s14 }
  0x20   :  { %p2174_p13 = por %p2173_p12, %p2172_p11 }
  0x22   :  { %p2175_p0 = pnand %p2174_p13, %p2168_p10 }
  0x24   :  { %2178 = shalt.err (!%p2175_p0)
}
  0x25   :  { %50 = dma.hbm_to_vmem [thread:$0]  %s3149_s2, 8192, %s45_s12, [#allocation7], %s2228_s24, %s2228_s24, %s2229_s25  }
  0x26   :  { %s2187_s0 = scalar_lea.vmem %s59_s1, 2048  ;;  %p2192_p2 = scmp.lt.s32.totalorder %s59_s1, %s59_s1 }
  0x27   :  { %p2188_p1 = scmp.ne.s32.totalorder %s59_s1, %s2187_s0  ;;  %p2193_p3 = scmp.lt.s32.totalorder %s2187_s0, %s2187_s0 }
  0x29   :  { %p2194_p4 = por %p2193_p3, %p2192_p2 }
  0x2b   :  { %p2195_p5 = pnand %p2194_p4, %p2188_p1 }
  0x2d   :  { %2198 = shalt.err (!%p2195_p5)
}
  0x2e   :  { %64 = dma.hbm_to_vmem [thread:$0]  %s3151_s4, 2048, %s59_s1, [#allocation10], %s2231_s7, %s2231_s7, %s2232_s8  }
  0x2f   :  { %2219 = dma.done.wait [#allocation4], 256  }
  0x30   :  { %2220 = vsyncadd [#allocation4], 4294967040 }
  0x31   :  { %2221 = dma.done.wait [#allocation7], 9728  }
  0x32   :  { %2222 = vsyncadd [#allocation7], 4294957568 }
  0x33   :  { %2223 = dma.done.wait [#allocation10], 2048  }
  0x34   :  { %2224 = vsyncadd [#allocation10], 4294965248  ;;  %v3154_v0 = vmov 0.0   ;;  %vm122_vm0 = vcmask 1044480   ;;  %v90_v1 = vld [vmem:[#allocation6 + $0x48] sm:$0x1f] }
  0x35   :  { %199 = vmatprep.mubr.f32.mxu1 %v3154_v0  ;;  %429 = vmatprep.mubr.f32.mxu0 %v3154_v0  ;;  %v2293_v2 = vld [vmem:[#allocation8 + $0x1e8] sm:$0xff]  ;;  %v89_v3 = vld [vmem:[#allocation6 + $0x40] sm:$0x1f]  ;;  %v79_v13 = vld [vmem:[#allocation3] sm:$0xff]  ;;  %vm115_vm1 = vcmask 171008   ;;  %vm2236_vm2 = vmmov 0  }
  0x36   :  { %3248 = vst [vmem:[#allocation16_spill] sm:$0xff] %v2293_v2  ;;  %1903 = vmatprep.subr.msk.mxu1 %vm122_vm0, %v90_v1  ;;  %365 = vmatprep.subr.mxu0 %v2293_v2  ;;  %v2297_v4 = vld [vmem:[#allocation8 + $0x1e0] sm:$0xff]  ;;  %v86_v5 = vld [vmem:[#allocation6 + $0x28] sm:$0xff]  ;;  %v92_v14 = vld [vmem:[#allocation6 + $0x58] sm:$0x1f]  ;;  %s2237_s20 = smov [#allocation11]  }
  0x37   :  { %v2299_v6 = vld [vmem:[#allocation8 + $0x1c8] sm:$0xff]  ;;  %1904 = vmatpush1.msk.msra.mxu1 %vm122_vm0, %v89_v3  ;;  %366 = vmatpush1.msra.mxu0 %v2297_v4  ;;  %v85_v7 = vld [vmem:[#allocation6 + $0x20] sm:$0xff]  ;;  %v91_v16 = vld [vmem:[#allocation6 + $0x50] sm:$0x1f]  ;;  %s1892_s21 = sshll.u32 %s2237_s20, 4  ;;  %s1893_s21 = int_to_ptr.vmem [resolvable:$true] %s1892_s21 }
  0x38   :  { %v2303_v8 = vld [vmem:[#allocation8 + $0x1c0] sm:$0xff]  ;;  %v82_v9 = vld [vmem:[#allocation6 + $0x8] sm:$0xff]  ;;  %163 = vmatprep.subr.mxu1 %v86_v5  ;;  %367 = vmatprep.subr.mxu0 %v2299_v6  ;;  %v88_v19 = vld [vmem:[#allocation6 + $0x38] sm:$0xff]  ;;  %s2199_s22 = scalar_lea.vmem %s1893_s21, 32  ;;  %p2204_p7 = scmp.lt.s32.totalorder %s1893_s21, %s1893_s21 }
  0x39   :  { %3249 = vst [vmem:[#allocation17_spill] sm:$0xff] %v2303_v8  ;;  %v2306_v10 = vld [vmem:[#allocation8 + $0x1a8] sm:$0xff]  ;;  %v81_v11 = vld [vmem:[#allocation6] sm:$0xff]  ;;  %164 = vmatpush1.msra.mxu1 %v85_v7  ;;  %368 = vmatpush1.msra.mxu0 %v2303_v8  ;;  %v2325_v21 = vld [vmem:[#allocation3 + $0x8] sm:$0xff]  ;;  %p2200_p6 = scmp.ne.s32.totalorder %s1893_s21, %s2199_s22  ;;  %p2205_p8 = scmp.lt.s32.totalorder %s2199_s22, %s2199_s22 }
  0x3a   :  { %v2308_v12 = vld [vmem:[#allocation8 + $0x1a0] sm:$0xff]  ;;  %165 = vmatprep.subr.mxu1 %v82_v9  ;;  %369 = vmatprep.subr.mxu0 %v2306_v10  ;;  %v2312_v15 = vld [vmem:[#allocation8 + $0x188] sm:$0xff]  ;;  %v87_v22 = vld [vmem:[#allocation6 + $0x30] sm:$0xff] }
  0x3b   :  { %166 = vmatpush1.msra.mxu1 %v81_v11  ;;  %370 = vmatpush1.msra.mxu0 %v2308_v12  ;;  %v2315_v17 = vld [vmem:[#allocation8 + $0x180] sm:$0xff]  ;;  %v2319_v18 = vld [vmem:[#allocation8 + $0x168] sm:$0xff]  ;;  %v84_v24 = vld [vmem:[#allocation6 + $0x18] sm:$0xff]  ;;  %p2206_p9 = por %p2205_p8, %p2204_p7 }
  0x3c   :  { %1905 = vmatmul.mubr.msk.f32.vlgmr.msra.gmra.mxu1 %vm115_vm1, %v79_v13  ;;  %1907 = vmatprep.subr.msk.mxu1 %vm122_vm0, %v92_v14  ;;  %v2323_v20 = vld [vmem:[#allocation8 + $0x160] sm:$0xff]  ;;  %v2329_v23 = vld [vmem:[#allocation8 + $0x148] sm:$0xff]  ;;  %v83_v26 = vld [vmem:[#allocation6 + $0x10] sm:$0xff] }
  0x3d   :  { %371 = vmatprep.subr.mxu0 %v2312_v15  ;;  %1908 = vmatpush1.msk.msra.mxu1 %vm122_vm0, %v91_v16  ;;  %v2332_v25 = vld [vmem:[#allocation8 + $0x140] sm:$0xff]  ;;  %v2337_v27 = vld [vmem:[#allocation8 + $0x128] sm:$0xff]  ;;  %v2343_v29 = vld [vmem:[#allocation8 + $0x1f8] sm:$0xff]  ;;  %p2207_p10 = pnand %p2206_p9, %p2200_p6 }
  0x3e   :  { %372 = vmatpush1.msra.mxu0 %v2315_v17  ;;  %205 = vmatprep.mubr.f32.mxu1 %v3154_v0  ;;  %v2340_v28 = vld [vmem:[#allocation8 + $0x120] sm:$0xff]  ;;  %3250 = vst [vmem:[#allocation18_spill] sm:$0xff] %v2343_v29  ;;  %v2346_v30 = vld [vmem:[#allocation8 + $0x108] sm:$0xff]  ;;  %v2348_v31 = vld [vmem:[#allocation8 + $0x1f0] sm:$0xff] }
  0x3f   :  { %373 = vmatprep.subr.mxu0 %v2319_v18  ;;  %240 = vmatprep.subr.mxu1 %v88_v19  ;;  %v2352_v32 = vld [vmem:[#allocation8 + $0x100] sm:$0xff]  ;;  %v2354_v33 = vld [vmem:[#allocation8 + $0x1d8] sm:$0xff]  ;;  %v2358_v34 = vld [vmem:[#allocation8 + $0xe8] sm:$0xff] }
  0x40   :  { %374 = vmatpush1.msra.mxu0 %v2323_v20  ;;  %1906 = vmatmul.mubr.msk.f32.gmra.mxu1 %vm115_vm1, %v2325_v21  ;;  %v2360_v35 = vld [vmem:[#allocation8 + $0x1d0] sm:$0xff]  ;;  %v2364_v36 = vld [vmem:[#allocation8 + $0xe0] sm:$0xff]  ;;  %v2366_v37 = vld [vmem:[#allocation8 + $0x1b8] sm:$0xff] }
  0x41   :  { %241 = vmatpush1.msra.mxu1 %v87_v22  ;;  %375 = vmatprep.subr.mxu0 %v2329_v23  ;;  %v2370_v38 = vld [vmem:[#allocation8 + $0xc8] sm:$0xff]  ;;  %v2372_v39 = vld [vmem:[#allocation8 + $0x1b0] sm:$0xff]  ;;  %v2376_v40 = vld [vmem:[#allocation8 + $0xc0] sm:$0xff] }
  0x42   :  { %242 = vmatprep.subr.mxu1 %v84_v24  ;;  %376 = vmatpush1.msra.mxu0 %v2332_v25  ;;  %v2378_v41 = vld [vmem:[#allocation8 + $0x198] sm:$0xff]  ;;  %v2382_v42 = vld [vmem:[#allocation8 + $0xa8] sm:$0xff]  ;;  %v2384_v43 = vld [vmem:[#allocation8 + $0x190] sm:$0xff] }
  0x43   :  { %243 = vmatpush1.msra.mxu1 %v83_v26  ;;  %377 = vmatprep.subr.mxu0 %v2337_v27  ;;  %v2388_v44 = vld [vmem:[#allocation8 + $0xa0] sm:$0xff]  ;;  %v2390_v45 = vld [vmem:[#allocation8 + $0x178] sm:$0xff]  ;;  %v2394_v46 = vld [vmem:[#allocation8 + $0x88] sm:$0xff] }
  0x44   :  { %276 = vmatprep.mubr.f32.mxu1 %v3154_v0  ;;  %378 = vmatpush1.msra.mxu0 %v2340_v28  ;;  %3251 = vst [vmem:[#allocation19_spill] sm:$0xff] %v2394_v46  ;;  %v2396_v47 = vld [vmem:[#allocation8 + $0x170] sm:$0xff]  ;;  %v2400_v48 = vld [vmem:[#allocation8 + $0x80] sm:$0xff]  ;;  %v2402_v49 = vld [vmem:[#allocation8 + $0x158] sm:$0xff] }
  0x45   :  { %436 = vmatprep.subr.mxu1 %v2343_v29  ;;  %1909 = vmatmul.mubr.msk.f32.vlgmr.msra.gmra.mxu1 %vm115_vm1, %v79_v13  ;;  %3252 = vst [vmem:[#allocation20_spill] sm:$0xff] %v2400_v48  ;;  %v2406_v50 = vld [vmem:[#allocation8 + $0x68] sm:$0xff]  ;;  %v2408_v51 = vld [vmem:[#allocation8 + $0x150] sm:$0xff]  ;;  %v2412_v52 = vld [vmem:[#allocation8 + $0x60] sm:$0xff] }
  0x46   :  { %379 = vmatprep.subr.mxu0 %v2346_v30  ;;  %437 = vmatpush1.msra.mxu1 %v2348_v31  ;;  %3253 = vst [vmem:[#allocation21_spill] sm:$0xff] %v2406_v50  ;;  %3254 = vst [vmem:[#allocation22_spill] sm:$0xff] %v2412_v52  ;;  %v2414_v53 = vld [vmem:[#allocation8 + $0x138] sm:$0xff]  ;;  %v2418_v54 = vld [vmem:[#allocation8 + $0x48] sm:$0xff] }
  0x47   :  { %380 = vmatpush1.msra.mxu0 %v2352_v32  ;;  %438 = vmatprep.subr.mxu1 %v2354_v33  ;;  %3255 = vst [vmem:[#allocation23_spill] sm:$0xff] %v2418_v54  ;;  %v2420_v55 = vld [vmem:[#allocation8 + $0x130] sm:$0xff]  ;;  %v2424_v56 = vld [vmem:[#allocation8 + $0x40] sm:$0xff]  ;;  %v2426_v57 = vld [vmem:[#allocation8 + $0x118] sm:$0xff] }
  0x48   :  { %381 = vmatprep.subr.mxu0 %v2358_v34  ;;  %439 = vmatpush1.msra.mxu1 %v2360_v35  ;;  %3256 = vst [vmem:[#allocation24_spill] sm:$0xff] %v2424_v56  ;;  %v2430_v58 = vld [vmem:[#allocation8 + $0x28] sm:$0xff]  ;;  %v2432_v59 = vld [vmem:[#allocation8 + $0x110] sm:$0xff]  ;;  %v2436_v60 = vld [vmem:[#allocation8 + $0x20] sm:$0xff] }
  0x49   :  { %382 = vmatpush1.msra.mxu0 %v2364_v36  ;;  %440 = vmatprep.subr.mxu1 %v2366_v37  ;;  %3257 = vst [vmem:[#allocation25_spill] sm:$0xff] %v2430_v58  ;;  %3258 = vst [vmem:[#allocation26_spill] sm:$0xff] %v2436_v60  ;;  %v2438_v61 = vld [vmem:[#allocation8 + $0xf8] sm:$0xff]  ;;  %v2442_v62 = vld [vmem:[#allocation8 + $0x8] sm:$0xff] }
  0x4a   :  { %383 = vmatprep.subr.mxu0 %v2370_v38  ;;  %441 = vmatpush1.msra.mxu1 %v2372_v39  ;;  %3259 = vst [vmem:[#allocation27_spill] sm:$0xff] %v2442_v62  ;;  %v2444_v63 = vld [vmem:[#allocation8 + $0xf0] sm:$0xff]  ;;  %v2448_v1 = vld [vmem:[#allocation8] sm:$0xff]  ;;  %v2450_v3 = vld [vmem:[#allocation8 + $0xd8] sm:$0xff] }
  0x4b   :  { %384 = vmatpush1.msra.mxu0 %v2376_v40  ;;  %442 = vmatprep.subr.mxu1 %v2378_v41  ;;  %3260 = vst [vmem:[#allocation28_spill] sm:$0xff] %v2448_v1  ;;  %v2454_v5 = vld [vmem:[#allocation8 + $0xd0] sm:$0xff]  ;;  %v2458_v7 = vld [vmem:[#allocation8 + $0xb8] sm:$0xff] }
  0x4c   :  { %385 = vmatprep.subr.mxu0 %v2382_v42  ;;  %443 = vmatpush1.msra.mxu1 %v2384_v43  ;;  %v2462_v9 = vld [vmem:[#allocation8 + $0xb0] sm:$0xff]  ;;  %v2466_v11 = vld [vmem:[#allocation8 + $0x98] sm:$0xff] }
  0x4d   :  { %386 = vmatpush1.msra.mxu0 %v2388_v44  ;;  %444 = vmatprep.subr.mxu1 %v2390_v45  ;;  %3261 = vst [vmem:[#allocation29_spill] sm:$0xff] %v2466_v11  ;;  %v2469_v13 = vld [vmem:[#allocation8 + $0x90] sm:$0xff]  ;;  %v2473_v14 = vld [vmem:[#allocation8 + $0x78] sm:$0xff] }
  0x4e   :  { %387 = vmatprep.subr.mxu0 %v2394_v46  ;;  %445 = vmatpush1.msra.mxu1 %v2396_v47  ;;  %3262 = vst [vmem:[#allocation30_spill] sm:$0xff] %v2469_v13  ;;  %3263 = vst [vmem:[#allocation31_spill] sm:$0xff] %v2473_v14  ;;  %v2477_v16 = vld [vmem:[#allocation8 + $0x70] sm:$0xff]  ;;  %v2482_v19 = vld [vmem:[#allocation8 + $0x58] sm:$0xff] }
  0x4f   :  { %388 = vmatpush1.msra.mxu0 %v2400_v48  ;;  %446 = vmatprep.subr.mxu1 %v2402_v49  ;;  %3264 = vst [vmem:[#allocation32_spill] sm:$0xff] %v2477_v16  ;;  %3265 = vst [vmem:[#allocation33_spill] sm:$0xff] %v2482_v19  ;;  %v2486_v22 = vld [vmem:[#allocation8 + $0x50] sm:$0xff]  ;;  %v2490_v24 = vld [vmem:[#allocation8 + $0x38] sm:$0xff] }
  0x50   :  { %389 = vmatprep.subr.mxu0 %v2406_v50  ;;  %447 = vmatpush1.msra.mxu1 %v2408_v51  ;;  %3266 = vst [vmem:[#allocation34_spill] sm:$0xff] %v2486_v22  ;;  %3267 = vst [vmem:[#allocation35_spill] sm:$0xff] %v2490_v24  ;;  %v2498_v26 = vld [vmem:[#allocation8 + $0x18] sm:$0xff] }
  0x51   :  { %390 = vmatpush1.msra.mxu0 %v2412_v52  ;;  %448 = vmatprep.subr.mxu1 %v2414_v53  ;;  %3269 = vst [vmem:[#allocation37_spill] sm:$0xff] %v2498_v26 }
  0x52   :  { %391 = vmatprep.subr.mxu0 %v2418_v54  ;;  %449 = vmatpush1.msra.mxu1 %v2420_v55 }
  0x53   :  { %392 = vmatpush1.msra.mxu0 %v2424_v56  ;;  %450 = vmatprep.subr.mxu1 %v2426_v57 }
  0x54   :  { %393 = vmatprep.subr.mxu0 %v2430_v58  ;;  %451 = vmatpush1.msra.mxu1 %v2432_v59 }
  0x55   :  { %394 = vmatpush1.msra.mxu0 %v2436_v60  ;;  %452 = vmatprep.subr.mxu1 %v2438_v61 }
  0x56   :  { %395 = vmatprep.subr.mxu0 %v2442_v62  ;;  %453 = vmatpush1.msra.mxu1 %v2444_v63 }
  0x57   :  { %396 = vmatpush1.msra.mxu0 %v2448_v1  ;;  %454 = vmatprep.subr.mxu1 %v2450_v3 }
  0x58   :  { %430 = vmatmul.mubr.f32.vlgmr.msra.gmra.mxu0 %v3154_v0  ;;  %455 = vmatpush1.msra.mxu1 %v2454_v5 }
  0x59   :  { %456 = vmatprep.subr.mxu1 %v2458_v7  ;;  %282 = vmatprep.mubr.f32.mxu1 %v3154_v0 }
  0x5a   :  { %457 = vmatpush1.msra.mxu1 %v2462_v9  ;;  %530 = vmatprep.subr.mxu0 %v2293_v2 }
  0x5b   :  { %458 = vmatprep.subr.mxu1 %v2466_v11  ;;  %1910 = vmatmul.mubr.msk.f32.gmra.mxu1 %vm115_vm1, %v2325_v21  ;;  %v2494_v21 = vld [vmem:[#allocation8 + $0x30] sm:$0xff] }
  0x5c   :  { %459 = vmatpush1.msra.mxu1 %v2469_v13  ;;  %500 = vmatprep.mubr.f32.mxu1 %v3154_v0  ;;  %3268 = vst [vmem:[#allocation36_spill] sm:$0xff] %v2494_v21  ;;  %v2502_v0 = vld [vmem:[#allocation8 + $0x10] sm:$0xff] }
  0x5d   :  { %460 = vmatprep.subr.mxu1 %v2473_v14  ;;  %531 = vmatpush1.msra.mxu0 %v2297_v4  ;;  %3270 = vst [vmem:[#allocation38_spill] sm:$0xff] %v2502_v0 }
  0x5e   :  { %461 = vmatpush1.msra.mxu1 %v2477_v16  ;;  %532 = vmatprep.subr.mxu0 %v2299_v6 }
  0x5f   :  { %462 = vmatprep.subr.mxu1 %v2482_v19  ;;  %533 = vmatpush1.msra.mxu0 %v2303_v8  ;;  %v3271_v8 = vmov 0.0  }
  0x60   :  { %463 = vmatpush1.msra.mxu1 %v2486_v22  ;;  %534 = vmatprep.subr.mxu0 %v2306_v10 }
  0x61   :  { %464 = vmatprep.subr.mxu1 %v2490_v24  ;;  %535 = vmatpush1.msra.mxu0 %v2308_v12 }
  0x62   :  { %465 = vmatpush1.msra.mxu1 %v2494_v21  ;;  %536 = vmatprep.subr.mxu0 %v2312_v15 }
  0x63   :  { %466 = vmatprep.subr.mxu1 %v2498_v26  ;;  %537 = vmatpush1.msra.mxu0 %v2315_v17 }
  0x64   :  { %467 = vmatpush1.msra.mxu1 %v2502_v0  ;;  %538 = vmatprep.subr.mxu0 %v2319_v18 }
  0x65   :  { %501 = vmatmul.mubr.f32.vlgmr.msra.gmra.mxu1 %v3271_v8  ;;  %601 = vmatprep.subr.mxu1 %v2343_v29 }
  0x66   :  { %602 = vmatpush1.msra.mxu1 %v2348_v31  ;;  %539 = vmatpush1.msra.mxu0 %v2323_v20 }
  0x67   :  { %603 = vmatprep.subr.mxu1 %v2354_v33  ;;  %540 = vmatprep.subr.mxu0 %v2329_v23 }
  0x68   :  { %604 = vmatpush1.msra.mxu1 %v2360_v35  ;;  %541 = vmatpush1.msra.mxu0 %v2332_v25 }
  0x69   :  { %605 = vmatprep.subr.mxu1 %v2366_v37  ;;  %542 = vmatprep.subr.mxu0 %v2337_v27 }
  0x6a   :  { %606 = vmatpush1.msra.mxu1 %v2372_v39  ;;  %543 = vmatpush1.msra.mxu0 %v2340_v28 }
  0x6b   :  { %607 = vmatprep.subr.mxu1 %v2378_v41  ;;  %544 = vmatprep.subr.mxu0 %v2346_v30 }
  0x6c   :  { %608 = vmatpush1.msra.mxu1 %v2384_v43  ;;  %545 = vmatpush1.msra.mxu0 %v2352_v32 }
  0x6d   :  { %609 = vmatprep.subr.mxu1 %v2390_v45  ;;  %546 = vmatprep.subr.mxu0 %v2358_v34 }
  0x6e   :  { %610 = vmatpush1.msra.mxu1 %v2396_v47  ;;  %547 = vmatpush1.msra.mxu0 %v2364_v36 }
  0x6f   :  { %611 = vmatprep.subr.mxu1 %v2402_v49  ;;  %548 = vmatprep.subr.mxu0 %v2370_v38 }
  0x70   :  { %612 = vmatpush1.msra.mxu1 %v2408_v51  ;;  %549 = vmatpush1.msra.mxu0 %v2376_v40 }
  0x71   :  { %613 = vmatprep.subr.mxu1 %v2414_v53  ;;  %550 = vmatprep.subr.mxu0 %v2382_v42 }
  0x72   :  { %614 = vmatpush1.msra.mxu1 %v2420_v55  ;;  %551 = vmatpush1.msra.mxu0 %v2388_v44 }
  0x73   :  { %615 = vmatprep.subr.mxu1 %v2426_v57  ;;  %552 = vmatprep.subr.mxu0 %v2394_v46 }
  0x74   :  { %616 = vmatpush1.msra.mxu1 %v2432_v59  ;;  %553 = vmatpush1.msra.mxu0 %v2400_v48 }
  0x75   :  { %617 = vmatprep.subr.mxu1 %v2438_v61  ;;  %554 = vmatprep.subr.mxu0 %v2406_v50 }
  0x76   :  { %618 = vmatpush1.msra.mxu1 %v2444_v63  ;;  %555 = vmatpush1.msra.mxu0 %v2412_v52 }
  0x77   :  { %619 = vmatprep.subr.mxu1 %v2450_v3  ;;  %556 = vmatprep.subr.mxu0 %v2418_v54 }
  0x78   :  { %620 = vmatpush1.msra.mxu1 %v2454_v5  ;;  %557 = vmatpush1.msra.mxu0 %v2424_v56 }
  0x79   :  { %621 = vmatprep.subr.mxu1 %v2458_v7  ;;  %558 = vmatprep.subr.mxu0 %v2430_v58 }
  0x7a   :  { %622 = vmatpush1.msra.mxu1 %v2462_v9  ;;  %559 = vmatpush1.msra.mxu0 %v2436_v60 }
  0x7b   :  { %623 = vmatprep.subr.mxu1 %v2466_v11  ;;  %560 = vmatprep.subr.mxu0 %v2442_v62 }
  0x7c   :  { %624 = vmatpush1.msra.mxu1 %v2469_v13  ;;  %561 = vmatpush1.msra.mxu0 %v2448_v1  ;;  %v95_v1 = vlaneseq }
  0x7d   :  { %625 = vmatprep.subr.mxu1 %v2473_v14  ;;  %594 = vmatprep.mubr.f32.mxu0 %v3271_v8 }
  0x7e   :  { %626 = vmatpush1.msra.mxu1 %v2477_v16  ;;  %665 = vmatprep.mubr.f32.mxu1 %v3271_v8  ;;  %v96_v62 = vshrl.u32 %v95_v1, 7  ;;  %v93_v8 = vld [vmem:[%s3150_s3] sm:$0xf] }
  0x7f   :  { %627 = vmatprep.subr.mxu1 %v2482_v19  ;;  %713 = vmatprep.subr.mxu0 %v2293_v2 }
  0x80   :  { %628 = vmatpush1.msra.mxu1 %v2486_v22  ;;  %v97_v60 = vsub.s32 0, %v96_v62  ;;  %v101_v2 = vsub.s32 1, %v96_v62 }
  0x81   :  { %629 = vmatprep.subr.mxu1 %v2490_v24 }
  0x82   :  { %630 = vmatpush1.msra.mxu1 %v2494_v21  ;;  %v98_v58 = vrot.slane %v93_v8, %v97_v60  ;;  %v102_v22 = vrot.slane %v93_v8, %v101_v2  ;;  %v105_v21 = vsub.s32 2, %v96_v62 }
  0x83   :  { %631 = vmatprep.subr.mxu1 %v2498_v26 }
  0x84   :  { %632 = vmatpush1.msra.mxu1 %v2502_v0  ;;  %v109_v0 = vsub.s32 3, %v96_v62  ;;  %v106_v1 = vrot.slane %v93_v8, %v105_v21 }
  0x85   :  { %784 = vmatprep.subr.mxu1 %v2343_v29 }
  0x86   :  { %v110_v14 = vrot.slane %v93_v8, %v109_v0 }
  0xfc   :  { %v201_v56 = vpop.f32.mrf.mxu1 }
  0xfd   :  { %v202_v24 = vadd.f32 %v201_v56, %v98_v58 }
  0xfe   :  { %v203_v19 = vpop.f32.mrf.mxu1 }
  0xff   :  { %289 = vst [vmem:[#allocation2 + $0x30] sm:$0xff] %v202_v24  ;;  %v204_v26 = vadd.f32 %v203_v19, %v102_v22 }
 0x100   :  { %v207_v54 = vpop.f32.mrf.mxu1 }
 0x101   :  { %290 = vst [vmem:[#allocation2] sm:$0xff] %v204_v26  ;;  %v208_v29 = vadd.f32 %v207_v54, %v98_v58 }
 0x102   :  { %v209_v16 = vpop.f32.mrf.mxu1 }
 0x103   :  { %293 = vst [vmem:[#allocation2 + $0x8] sm:$0xff] %v208_v29  ;;  %v210_v52 = vadd.f32 %v209_v16, %v102_v22 }
 0x105   :  { %294 = vst [vmem:[#allocation2 + $0x20] sm:$0xff] %v210_v52  ;;  %v278_v50 = vpop.f32.mrf.mxu1 }
 0x106   :  { %v279_v13 = vadd.f32 %v278_v50, %v106_v1  ;;  %v361_v26 = vld [vmem:[#allocation2 + $0x30] sm:$0x3] }
 0x107   :  { %v280_v60 = vpop.f32.mrf.mxu1 }
 0x108   :  { %291 = vst [vmem:[#allocation2 + $0x18] sm:$0xff] %v279_v13  ;;  %v281_v2 = vadd.f32 %v280_v60, %v110_v14  ;;  %v362_v24 = vld [vmem:[#allocation2] sm:$0x3] }
 0x10a   :  { %292 = vst [vmem:[#allocation2 + $0x10] sm:$0xff] %v281_v2 }
 0x10f   :  { %v363_v22 = vld [vmem:[#allocation2 + $0x18] sm:$0x3] }
 0x111   :  { %v364_v8 = vld [vmem:[#allocation2 + $0x10] sm:$0x3] }
 0x118   :  { %v431_v56 = vpop.f32.mrf.mxu0 }
 0x119   :  { %v507_v58 = vadd.f32 %v431_v56, %v361_v26 }
 0x11a   :  { %v433_v48 = vpop.f32.mrf.mxu0 }
 0x11b   :  { %v284_v19 = vpop.f32.mrf.mxu1  ;;  %v508_v11 = vadd.f32 %v433_v48, %v362_v24 }
 0x11c   :  { %v285_v62 = vadd.f32 %v284_v19, %v106_v1 }
 0x11d   :  { %v286_v54 = vpop.f32.mrf.mxu1  ;;  %1975 = vtanh.f32 %v508_v11 }
 0x11e   :  { %295 = vst [vmem:[#allocation2 + $0x28] sm:$0xff] %v285_v62  ;;  %v287_v29 = vadd.f32 %v286_v54, %v110_v14  ;;  %1977 = vtanh.f32 %v507_v58 }
 0x120   :  { %296 = vst [vmem:[#allocation2 + $0x38] sm:$0xff] %v287_v29  ;;  %v3272_v29 = vld [vmem:[#allocation17_spill] sm:$0xff] }
 0x125   :  { %v502_v0 = vpop.f32.mrf.mxu1 }
 0x126   :  { %v509_v60 = vadd.f32 %v502_v0, %v363_v22  ;;  %v3273_v0 = vld [vmem:[#allocation29_spill] sm:$0xff]  ;;  %v3279_v22 = vld [vmem:[#allocation32_spill] sm:$0xff] }
 0x127   :  { %v504_v50 = vpop.f32.mrf.mxu1 }
 0x128   :  { %v510_v52 = vadd.f32 %v504_v50, %v364_v8  ;;  %v3274_v8 = vld [vmem:[#allocation20_spill] sm:$0xff]  ;;  %v3275_v50 = vld [vmem:[#allocation30_spill] sm:$0xff] }
 0x12a   :  { %1979 = vtanh.f32 %v510_v52  ;;  %v1976_v13 = vpop.eup %1975  ;;  %v3276_v52 = vld [vmem:[#allocation21_spill] sm:$0xff] }
 0x12b   :  { %v1978_v16 = vpop.eup %1977  ;;  %v516_v21 = vmul.f32 0.5, %v1976_v13  ;;  %1981 = vtanh.f32 %v509_v60  ;;  %v3277_v13 = vld [vmem:[#allocation31_spill] sm:$0xff]  ;;  %v3281_v60 = vld [vmem:[#allocation33_spill] sm:$0xff] }
 0x12c   :  { %v515_v48 = vmul.f32 0.5, %v1978_v16  ;;  %v3278_v16 = vld [vmem:[#allocation22_spill] sm:$0xff] }
 0x12d   :  { %v519_v1 = vadd.f32 0.5, %v516_v21  ;;  %v3280_v21 = vld [vmem:[#allocation23_spill] sm:$0xff] }
 0x12e   :  { %v518_v2 = vadd.f32 0.5, %v515_v48  ;;  %v3282_v48 = vld [vmem:[#allocation24_spill] sm:$0xff] }
 0x12f   :  { %v521_v24 = vmul.f32 0.0, %v519_v1  ;;  %v3283_v1 = vld [vmem:[#allocation34_spill] sm:$0xff] }
 0x137   :  { %v1980_v56 = vpop.eup %1979 }
 0x138   :  { %v522_v14 = vmul.f32 %v1980_v56, %v518_v2  ;;  %v1982_v19 = vpop.eup %1981  ;;  %v3284_v2 = vld [vmem:[#allocation25_spill] sm:$0xff]  ;;  %v3285_v56 = vld [vmem:[#allocation35_spill] sm:$0xff] }
 0x139   :  { %v517_v62 = vmul.f32 0.5, %v1982_v19  ;;  %v3288_v19 = vld [vmem:[#allocation27_spill] sm:$0xff] }
 0x13a   :  { %v2574_v11 = vadd.f32 %v522_v14, %v521_v24  ;;  %v3286_v24 = vld [vmem:[#allocation26_spill] sm:$0xff]  ;;  %v3287_v14 = vld [vmem:[#allocation36_spill] sm:$0xff] }
 0x13b   :  { %v520_v26 = vadd.f32 0.5, %v517_v62  ;;  %v3289_v62 = vld [vmem:[#allocation37_spill] sm:$0xff] }
 0x13c   :  { %1983 = vtanh.f32 %v2574_v11 }
 0x149   :  { %v1984_v54 = vpop.eup %1983 }
 0x14a   :  { %v525_v58 = vmul.f32 %v1984_v54, %v520_v26  ;;  %v3290_v26 = vld [vmem:[#allocation28_spill] sm:$0xff]  ;;  %v3291_v54 = vmov 0.0  }
 0x14c   :  { %595 = vmatmul.mubr.f32.vlgmr.msra.gmra.mxu0 %v525_v58  ;;  %666 = vmatmul.mubr.f32.vlgmr.msra.gmra.mxu1 %v525_v58  ;;  %v3292_v58 = vld [vmem:[#allocation38_spill] sm:$0xff] }
 0x14d   :  { %714 = vmatpush1.msra.mxu0 %v2297_v4  ;;  %785 = vmatpush1.msra.mxu1 %v2348_v31 }
 0x14e   :  { %715 = vmatprep.subr.mxu0 %v2299_v6  ;;  %786 = vmatprep.subr.mxu1 %v2354_v33 }
 0x14f   :  { %716 = vmatpush1.msra.mxu0 %v3272_v29  ;;  %787 = vmatpush1.msra.mxu1 %v2360_v35 }
 0x150   :  { %717 = vmatprep.subr.mxu0 %v2306_v10  ;;  %788 = vmatprep.subr.mxu1 %v2366_v37 }
 0x151   :  { %718 = vmatpush1.msra.mxu0 %v2308_v12  ;;  %789 = vmatpush1.msra.mxu1 %v2372_v39 }
 0x152   :  { %719 = vmatprep.subr.mxu0 %v2312_v15  ;;  %790 = vmatprep.subr.mxu1 %v2378_v41 }
 0x153   :  { %720 = vmatpush1.msra.mxu0 %v2315_v17  ;;  %791 = vmatpush1.msra.mxu1 %v2384_v43 }
 0x154   :  { %721 = vmatprep.subr.mxu0 %v2319_v18  ;;  %792 = vmatprep.subr.mxu1 %v2390_v45 }
 0x155   :  { %722 = vmatpush1.msra.mxu0 %v2323_v20  ;;  %793 = vmatpush1.msra.mxu1 %v2396_v47 }
 0x156   :  { %723 = vmatprep.subr.mxu0 %v2329_v23  ;;  %794 = vmatprep.subr.mxu1 %v2402_v49 }
 0x157   :  { %724 = vmatpush1.msra.mxu0 %v2332_v25  ;;  %795 = vmatpush1.msra.mxu1 %v2408_v51 }
 0x158   :  { %725 = vmatprep.subr.mxu0 %v2337_v27  ;;  %796 = vmatprep.subr.mxu1 %v2414_v53 }
 0x159   :  { %726 = vmatpush1.msra.mxu0 %v2340_v28  ;;  %797 = vmatpush1.msra.mxu1 %v2420_v55 }
 0x15a   :  { %727 = vmatprep.subr.mxu0 %v2346_v30  ;;  %798 = vmatprep.subr.mxu1 %v2426_v57 }
 0x15b   :  { %728 = vmatpush1.msra.mxu0 %v2352_v32  ;;  %799 = vmatpush1.msra.mxu1 %v2432_v59 }
 0x15c   :  { %729 = vmatprep.subr.mxu0 %v2358_v34  ;;  %800 = vmatprep.subr.mxu1 %v2438_v61 }
 0x15d   :  { %730 = vmatpush1.msra.mxu0 %v2364_v36  ;;  %801 = vmatpush1.msra.mxu1 %v2444_v63 }
 0x15e   :  { %731 = vmatprep.subr.mxu0 %v2370_v38  ;;  %802 = vmatprep.subr.mxu1 %v2450_v3 }
 0x15f   :  { %732 = vmatpush1.msra.mxu0 %v2376_v40  ;;  %803 = vmatpush1.msra.mxu1 %v2454_v5 }
 0x160   :  { %733 = vmatprep.subr.mxu0 %v2382_v42  ;;  %804 = vmatprep.subr.mxu1 %v2458_v7 }
 0x161   :  { %734 = vmatpush1.msra.mxu0 %v2388_v44  ;;  %805 = vmatpush1.msra.mxu1 %v2462_v9 }
 0x162   :  { %735 = vmatprep.subr.mxu0 %v2394_v46  ;;  %806 = vmatprep.subr.mxu1 %v3273_v0 }
 0x163   :  { %736 = vmatpush1.msra.mxu0 %v3274_v8  ;;  %807 = vmatpush1.msra.mxu1 %v3275_v50 }
 0x164   :  { %737 = vmatprep.subr.mxu0 %v3276_v52  ;;  %808 = vmatprep.subr.mxu1 %v3277_v13  ;;  %v529_v13 = vld [vmem:[#allocation2 + $0x10] sm:$0xc] }
 0x165   :  { %738 = vmatpush1.msra.mxu0 %v3278_v16  ;;  %809 = vmatpush1.msra.mxu1 %v3279_v22 }
 0x166   :  { %739 = vmatprep.subr.mxu0 %v3280_v21  ;;  %810 = vmatprep.subr.mxu1 %v3281_v60 }
 0x167   :  { %740 = vmatpush1.msra.mxu0 %v3282_v48  ;;  %811 = vmatpush1.msra.mxu1 %v3283_v1  ;;  %v3293_v1 = vld [vmem:[#allocation16_spill] sm:$0xff] }
 0x168   :  { %741 = vmatprep.subr.mxu0 %v3284_v2  ;;  %812 = vmatprep.subr.mxu1 %v3285_v56  ;;  %v3294_v2 = vld [vmem:[#allocation18_spill] sm:$0xff] }
 0x169   :  { %742 = vmatpush1.msra.mxu0 %v3286_v24  ;;  %813 = vmatpush1.msra.mxu1 %v3287_v14  ;;  %v526_v14 = vld [vmem:[#allocation2 + $0x30] sm:$0xc] }
 0x16a   :  { %743 = vmatprep.subr.mxu0 %v3288_v19  ;;  %814 = vmatprep.subr.mxu1 %v3289_v62 }
 0x16b   :  { %744 = vmatpush1.msra.mxu0 %v3290_v26  ;;  %777 = vmatprep.mubr.f32.mxu0 %v3291_v54  ;;  %v527_v26 = vld [vmem:[#allocation2] sm:$0xc] }
 0x16c   :  { %815 = vmatpush1.msra.mxu1 %v3292_v58  ;;  %848 = vmatprep.mubr.f32.mxu1 %v3291_v54 }
 0x16d   :  { %896 = vmatprep.subr.mxu0 %v3293_v1  ;;  %967 = vmatprep.subr.mxu1 %v3294_v2  ;;  %v528_v1 = vld [vmem:[#allocation2 + $0x18] sm:$0xc] }
 0x20c   :  { %v596_v56 = vpop.f32.mrf.mxu0  ;;  %v667_v24 = vpop.f32.mrf.mxu1 }
 0x20d   :  { %v676_v48 = vrot.slane %v596_v56, 6  ;;  %v678_v54 = vrot.slane %v667_v24, 6 }
 0x20e   :  { %v598_v60 = vpop.f32.mrf.mxu0  ;;  %v669_v19 = vpop.f32.mrf.mxu1 }
 0x20f   :  { %v684_v21 = vadd.f32 %v676_v48, %v526_v14  ;;  %v677_v62 = vrot.slane %v598_v60, 6  ;;  %v679_v22 = vrot.slane %v669_v19, 6  ;;  %v686_v52 = vadd.f32 %v678_v54, %v528_v1  ;;  %v3303_v54 = vld [vmem:[#allocation23_spill] sm:$0xff] }
 0x210   :  { %v699_v60 = vrot.slane %v2574_v11, 6  ;;  %v3296_v11 = vld [vmem:[#allocation29_spill] sm:$0xff] }
 0x211   :  { %1985 = vtanh.f32 %v684_v21  ;;  %v685_v16 = vadd.f32 %v677_v62, %v527_v26  ;;  %v687_v58 = vadd.f32 %v679_v22, %v529_v13  ;;  %v3301_v62 = vld [vmem:[#allocation22_spill] sm:$0xff]  ;;  %v3302_v26 = vld [vmem:[#allocation32_spill] sm:$0xff] }
 0x213   :  { %1987 = vtanh.f32 %v685_v16 }
 0x214   :  { %1989 = vtanh.f32 %v687_v58  ;;  %v3304_v58 = vld [vmem:[#allocation33_spill] sm:$0xff] }
 0x215   :  { %1991 = vtanh.f32 %v686_v52  ;;  %v3300_v52 = vld [vmem:[#allocation31_spill] sm:$0xff] }
 0x21e   :  { %v1986_v2 = vpop.eup %1985 }
 0x21f   :  { %v692_v50 = vmul.f32 0.5, %v1986_v2 }
 0x220   :  { %v1988_v8 = vpop.eup %1987 }
 0x221   :  { %v695_v56 = vadd.f32 0.5, %v692_v50  ;;  %v693_v0 = vmul.f32 0.5, %v1988_v8  ;;  %v1990_v48 = vpop.eup %1989  ;;  %v3298_v8 = vld [vmem:[#allocation30_spill] sm:$0xff]  ;;  %v3299_v50 = vld [vmem:[#allocation21_spill] sm:$0xff] }
 0x222   :  { %v1992_v13 = vpop.eup %1991 }
 0x223   :  { %v696_v46 = vadd.f32 0.5, %v693_v0  ;;  %v702_v21 = vmul.f32 %v1990_v48, %v695_v56  ;;  %v694_v16 = vmul.f32 0.5, %v1992_v13  ;;  %v3297_v0 = vld [vmem:[#allocation20_spill] sm:$0xff]  ;;  %v3307_v48 = vld [vmem:[#allocation25_spill] sm:$0xff] }
 0x224   :  { %v3305_v56 = vld [vmem:[#allocation24_spill] sm:$0xff] }
 0x225   :  { %v701_v14 = vmul.f32 %v699_v60, %v696_v46  ;;  %v697_v22 = vadd.f32 0.5, %v694_v16  ;;  %v3295_v46 = vld [vmem:[#allocation19_spill] sm:$0xff]  ;;  %v3306_v60 = vld [vmem:[#allocation34_spill] sm:$0xff]  ;;  %v3310_v13 = vld [vmem:[#allocation36_spill] sm:$0xff] }
 0x226   :  { %v3311_v16 = vld [vmem:[#allocation27_spill] sm:$0xff] }
 0x227   :  { %v2644_v19 = vadd.f32 %v702_v21, %v701_v14  ;;  %v3308_v14 = vld [vmem:[#allocation35_spill] sm:$0xff]  ;;  %v3309_v21 = vld [vmem:[#allocation26_spill] sm:$0xff] }
 0x229   :  { %1993 = vtanh.f32 %v2644_v19 }
 0x236   :  { %v1994_v1 = vpop.eup %1993 }
 0x237   :  { %v705_v24 = vmul.f32 %v1994_v1, %v697_v22  ;;  %v3312_v22 = vld [vmem:[#allocation37_spill] sm:$0xff]  ;;  %v3313_v1 = vld [vmem:[#allocation28_spill] sm:$0xff] }
 0x239   :  { %v711_v2 = vrot.slane %v705_v24, 2  ;;  %v3314_v24 = vmov 0.0  }
 0x23b   :  { %778 = vmatmul.mubr.f32.vlgmr.msra.gmra.mxu0 %v711_v2  ;;  %849 = vmatmul.mubr.f32.vlgmr.msra.gmra.mxu1 %v711_v2  ;;  %v3315_v2 = vld [vmem:[#allocation38_spill] sm:$0xff] }
 0x23c   :  { %897 = vmatpush1.msra.mxu0 %v2297_v4  ;;  %968 = vmatpush1.msra.mxu1 %v2348_v31 }
 0x23d   :  { %898 = vmatprep.subr.mxu0 %v2299_v6  ;;  %969 = vmatprep.subr.mxu1 %v2354_v33 }
 0x23e   :  { %899 = vmatpush1.msra.mxu0 %v3272_v29  ;;  %970 = vmatpush1.msra.mxu1 %v2360_v35 }
 0x23f   :  { %900 = vmatprep.subr.mxu0 %v2306_v10  ;;  %971 = vmatprep.subr.mxu1 %v2366_v37 }
 0x240   :  { %901 = vmatpush1.msra.mxu0 %v2308_v12  ;;  %972 = vmatpush1.msra.mxu1 %v2372_v39 }
 0x241   :  { %902 = vmatprep.subr.mxu0 %v2312_v15  ;;  %973 = vmatprep.subr.mxu1 %v2378_v41 }
 0x242   :  { %903 = vmatpush1.msra.mxu0 %v2315_v17  ;;  %974 = vmatpush1.msra.mxu1 %v2384_v43 }
 0x243   :  { %904 = vmatprep.subr.mxu0 %v2319_v18  ;;  %975 = vmatprep.subr.mxu1 %v2390_v45 }
 0x244   :  { %905 = vmatpush1.msra.mxu0 %v2323_v20  ;;  %976 = vmatpush1.msra.mxu1 %v2396_v47 }
 0x245   :  { %906 = vmatprep.subr.mxu0 %v2329_v23  ;;  %977 = vmatprep.subr.mxu1 %v2402_v49 }
 0x246   :  { %907 = vmatpush1.msra.mxu0 %v2332_v25  ;;  %978 = vmatpush1.msra.mxu1 %v2408_v51 }
 0x247   :  { %908 = vmatprep.subr.mxu0 %v2337_v27  ;;  %979 = vmatprep.subr.mxu1 %v2414_v53 }
 0x248   :  { %909 = vmatpush1.msra.mxu0 %v2340_v28  ;;  %980 = vmatpush1.msra.mxu1 %v2420_v55 }
 0x249   :  { %910 = vmatprep.subr.mxu0 %v2346_v30  ;;  %981 = vmatprep.subr.mxu1 %v2426_v57 }
 0x24a   :  { %911 = vmatpush1.msra.mxu0 %v2352_v32  ;;  %982 = vmatpush1.msra.mxu1 %v2432_v59 }
 0x24b   :  { %912 = vmatprep.subr.mxu0 %v2358_v34  ;;  %983 = vmatprep.subr.mxu1 %v2438_v61 }
 0x24c   :  { %913 = vmatpush1.msra.mxu0 %v2364_v36  ;;  %984 = vmatpush1.msra.mxu1 %v2444_v63 }
 0x24d   :  { %914 = vmatprep.subr.mxu0 %v2370_v38  ;;  %985 = vmatprep.subr.mxu1 %v2450_v3 }
 0x24e   :  { %915 = vmatpush1.msra.mxu0 %v2376_v40  ;;  %986 = vmatpush1.msra.mxu1 %v2454_v5 }
 0x24f   :  { %916 = vmatprep.subr.mxu0 %v2382_v42  ;;  %987 = vmatprep.subr.mxu1 %v2458_v7 }
 0x250   :  { %917 = vmatpush1.msra.mxu0 %v2388_v44  ;;  %988 = vmatpush1.msra.mxu1 %v2462_v9 }
 0x251   :  { %918 = vmatprep.subr.mxu0 %v3295_v46  ;;  %989 = vmatprep.subr.mxu1 %v3296_v11 }
 0x252   :  { %919 = vmatpush1.msra.mxu0 %v3297_v0  ;;  %990 = vmatpush1.msra.mxu1 %v3298_v8 }
 0x253   :  { %920 = vmatprep.subr.mxu0 %v3299_v50  ;;  %991 = vmatprep.subr.mxu1 %v3300_v52  ;;  %v709_v52 = vld [vmem:[#allocation2 + $0x10] sm:$0x30] }
 0x254   :  { %921 = vmatpush1.msra.mxu0 %v3301_v62  ;;  %992 = vmatpush1.msra.mxu1 %v3302_v26 }
 0x255   :  { %922 = vmatprep.subr.mxu0 %v3303_v54  ;;  %993 = vmatprep.subr.mxu1 %v3304_v58 }
 0x256   :  { %923 = vmatpush1.msra.mxu0 %v3305_v56  ;;  %994 = vmatpush1.msra.mxu1 %v3306_v60  ;;  %v3316_v60 = vld [vmem:[#allocation16_spill] sm:$0xff] }
 0x257   :  { %924 = vmatprep.subr.mxu0 %v3307_v48  ;;  %995 = vmatprep.subr.mxu1 %v3308_v14  ;;  %v3317_v48 = vld [vmem:[#allocation18_spill] sm:$0xff] }
 0x258   :  { %925 = vmatpush1.msra.mxu0 %v3309_v21  ;;  %996 = vmatpush1.msra.mxu1 %v3310_v13  ;;  %v706_v13 = vld [vmem:[#allocation2 + $0x30] sm:$0x30] }
 0x259   :  { %926 = vmatprep.subr.mxu0 %v3311_v16  ;;  %997 = vmatprep.subr.mxu1 %v3312_v22 }
 0x25a   :  { %927 = vmatpush1.msra.mxu0 %v3313_v1  ;;  %960 = vmatprep.mubr.f32.mxu0 %v3314_v24  ;;  %v707_v1 = vld [vmem:[#allocation2] sm:$0x30] }
 0x25b   :  { %998 = vmatpush1.msra.mxu1 %v3315_v2  ;;  %1031 = vmatprep.mubr.f32.mxu1 %v3314_v24 }
 0x25c   :  { %1079 = vmatprep.subr.mxu0 %v3316_v60  ;;  %1150 = vmatprep.subr.mxu1 %v3317_v48  ;;  %v708_v60 = vld [vmem:[#allocation2 + $0x18] sm:$0x30] }
 0x2fb   :  { %v779_v14 = vpop.f32.mrf.mxu0  ;;  %v850_v21 = vpop.f32.mrf.mxu1 }
 0x2fc   :  { %v859_v56 = vrot.slane %v779_v14, 4  ;;  %v861_v24 = vrot.slane %v850_v21, 4 }
 0x2fd   :  { %v781_v58 = vpop.f32.mrf.mxu0  ;;  %v852_v16 = vpop.f32.mrf.mxu1 }
 0x2fe   :  { %v867_v54 = vadd.f32 %v859_v56, %v706_v13  ;;  %v860_v22 = vrot.slane %v781_v58, 4  ;;  %v862_v26 = vrot.slane %v852_v16, 4  ;;  %v869_v50 = vadd.f32 %v861_v24, %v708_v60 }
 0x2ff   :  { %v882_v58 = vrot.slane %v2644_v19, 6 }
 0x300   :  { %1995 = vtanh.f32 %v867_v54  ;;  %v868_v62 = vadd.f32 %v860_v22, %v707_v1  ;;  %v870_v2 = vadd.f32 %v862_v26, %v709_v52 }
 0x302   :  { %1997 = vtanh.f32 %v868_v62 }
 0x303   :  { %1999 = vtanh.f32 %v870_v2 }
 0x304   :  { %2001 = vtanh.f32 %v869_v50 }
 0x30d   :  { %v1996_v48 = vpop.eup %1995 }
 0x30e   :  { %v875_v8 = vmul.f32 0.5, %v1996_v48 }
 0x30f   :  { %v1998_v0 = vpop.eup %1997 }
 0x310   :  { %v878_v14 = vadd.f32 0.5, %v875_v8  ;;  %v876_v11 = vmul.f32 0.5, %v1998_v0  ;;  %v2000_v56 = vpop.eup %1999 }
 0x311   :  { %v2002_v52 = vpop.eup %2001 }
 0x312   :  { %v879_v46 = vadd.f32 0.5, %v876_v11  ;;  %v885_v54 = vmul.f32 %v2000_v56, %v878_v14  ;;  %v877_v62 = vmul.f32 0.5, %v2002_v52  ;;  %v2797_v52 = vld [vmem:[#allocation8 + $0x1c8] sm:$0xff] }
 0x314   :  { %v884_v13 = vmul.f32 %v882_v58, %v879_v46  ;;  %v880_v26 = vadd.f32 0.5, %v877_v62  ;;  %v2800_v62 = vld [vmem:[#allocation8 + $0x1d8] sm:$0xff] }
 0x316   :  { %v2714_v16 = vadd.f32 %v885_v54, %v884_v13  ;;  %v2791_v54 = vld [vmem:[#allocation8 + $0x1e0] sm:$0xff] }
 0x318   :  { %2003 = vtanh.f32 %v2714_v16  ;;  %v1065_v0 = vrot.slane %v2714_v16, 6  ;;  %v2794_v16 = vld [vmem:[#allocation8 + $0x1f0] sm:$0xff] }
 0x325   :  { %v2004_v21 = vpop.eup %2003 }
 0x326   :  { %v888_v22 = vmul.f32 %v2004_v21, %v880_v26  ;;  %v2803_v26 = vld [vmem:[#allocation8 + $0x1c0] sm:$0xff]  ;;  %v2806_v21 = vld [vmem:[#allocation8 + $0x1d0] sm:$0xff] }
 0x328   :  { %v894_v1 = vrot.slane %v888_v22, 4  ;;  %v2809_v22 = vld [vmem:[#allocation8 + $0x1a8] sm:$0xff] }
 0x32a   :  { %961 = vmatmul.mubr.f32.vlgmr.msra.gmra.mxu0 %v894_v1  ;;  %1032 = vmatmul.mubr.f32.vlgmr.msra.gmra.mxu1 %v894_v1  ;;  %v2812_v1 = vld [vmem:[#allocation8 + $0x1b8] sm:$0xff] }
 0x32b   :  { %1080 = vmatpush1.msra.mxu0 %v2297_v4  ;;  %1151 = vmatpush1.msra.mxu1 %v2348_v31  ;;  %v3318_v4 = vld [vmem:[#allocation19_spill] sm:$0xff] }
 0x32c   :  { %1081 = vmatprep.subr.mxu0 %v2299_v6  ;;  %1152 = vmatprep.subr.mxu1 %v2354_v33  ;;  %v3319_v6 = vld [vmem:[#allocation29_spill] sm:$0xff]  ;;  %v3331_v31 = vld [vmem:[#allocation35_spill] sm:$0xff]  ;;  %v3333_v33 = vld [vmem:[#allocation36_spill] sm:$0xff] }
 0x32d   :  { %1082 = vmatpush1.msra.mxu0 %v3272_v29  ;;  %1153 = vmatpush1.msra.mxu1 %v2360_v35  ;;  %v3335_v35 = vld [vmem:[#allocation37_spill] sm:$0xff] }
 0x32e   :  { %1083 = vmatprep.subr.mxu0 %v2306_v10  ;;  %1154 = vmatprep.subr.mxu1 %v2366_v37  ;;  %v3320_v10 = vld [vmem:[#allocation20_spill] sm:$0xff]  ;;  %v3337_v37 = vmov 0.0  }
 0x32f   :  { %1084 = vmatpush1.msra.mxu0 %v2308_v12  ;;  %1155 = vmatpush1.msra.mxu1 %v2372_v39  ;;  %v3321_v12 = vld [vmem:[#allocation30_spill] sm:$0xff]  ;;  %v2781_v39 = vld [vmem:[#allocation8 + $0x1e8] sm:$0xff] }
 0x330   :  { %1085 = vmatprep.subr.mxu0 %v2312_v15  ;;  %1156 = vmatprep.subr.mxu1 %v2378_v41  ;;  %v3322_v15 = vld [vmem:[#allocation21_spill] sm:$0xff]  ;;  %3339 = vst [vmem:[#allocation17_spill] sm:$0xff] %v2781_v39 }
 0x331   :  { %1086 = vmatpush1.msra.mxu0 %v2315_v17  ;;  %1157 = vmatpush1.msra.mxu1 %v2384_v43  ;;  %v3323_v17 = vld [vmem:[#allocation31_spill] sm:$0xff] }
 0x332   :  { %1087 = vmatprep.subr.mxu0 %v2319_v18  ;;  %1158 = vmatprep.subr.mxu1 %v2390_v45  ;;  %v3324_v18 = vld [vmem:[#allocation22_spill] sm:$0xff] }
 0x333   :  { %1088 = vmatpush1.msra.mxu0 %v2323_v20  ;;  %1159 = vmatpush1.msra.mxu1 %v2396_v47  ;;  %v3325_v20 = vld [vmem:[#allocation32_spill] sm:$0xff] }
 0x334   :  { %1089 = vmatprep.subr.mxu0 %v2329_v23  ;;  %1160 = vmatprep.subr.mxu1 %v2402_v49  ;;  %v3326_v23 = vld [vmem:[#allocation23_spill] sm:$0xff] }
 0x335   :  { %1090 = vmatpush1.msra.mxu0 %v2332_v25  ;;  %1161 = vmatpush1.msra.mxu1 %v2408_v51  ;;  %v3327_v25 = vld [vmem:[#allocation33_spill] sm:$0xff] }
 0x336   :  { %1091 = vmatprep.subr.mxu0 %v2337_v27  ;;  %1162 = vmatprep.subr.mxu1 %v2414_v53  ;;  %v3328_v27 = vld [vmem:[#allocation24_spill] sm:$0xff] }
 0x337   :  { %1092 = vmatpush1.msra.mxu0 %v2340_v28  ;;  %1163 = vmatpush1.msra.mxu1 %v2420_v55  ;;  %v3329_v28 = vld [vmem:[#allocation34_spill] sm:$0xff] }
 0x338   :  { %1093 = vmatprep.subr.mxu0 %v2346_v30  ;;  %1164 = vmatprep.subr.mxu1 %v2426_v57  ;;  %v3330_v30 = vld [vmem:[#allocation25_spill] sm:$0xff]  ;;  %v890_v55 = vld [vmem:[#allocation2] sm:$0xc0] }
 0x339   :  { %1094 = vmatpush1.msra.mxu0 %v2352_v32  ;;  %1165 = vmatpush1.msra.mxu1 %v2432_v59  ;;  %v3332_v32 = vld [vmem:[#allocation26_spill] sm:$0xff]  ;;  %v892_v59 = vld [vmem:[#allocation2 + $0x10] sm:$0xc0] }
 0x33a   :  { %1095 = vmatprep.subr.mxu0 %v2358_v34  ;;  %1166 = vmatprep.subr.mxu1 %v2438_v61  ;;  %v3334_v34 = vld [vmem:[#allocation27_spill] sm:$0xff] }
 0x33b   :  { %1096 = vmatpush1.msra.mxu0 %v2364_v36  ;;  %1167 = vmatpush1.msra.mxu1 %v2444_v63  ;;  %v3336_v36 = vld [vmem:[#allocation28_spill] sm:$0xff] }
 0x33c   :  { %1097 = vmatprep.subr.mxu0 %v2370_v38  ;;  %1168 = vmatprep.subr.mxu1 %v2450_v3  ;;  %v3338_v38 = vld [vmem:[#allocation38_spill] sm:$0xff]  ;;  %v891_v3 = vld [vmem:[#allocation2 + $0x18] sm:$0xc0] }
 0x33d   :  { %1098 = vmatpush1.msra.mxu0 %v2376_v40  ;;  %1169 = vmatpush1.msra.mxu1 %v2454_v5  ;;  %v2784_v40 = vld [vmem:[#allocation8 + $0x1f8] sm:$0xff] }
 0x33e   :  { %1099 = vmatprep.subr.mxu0 %v2382_v42  ;;  %1170 = vmatprep.subr.mxu1 %v2458_v7  ;;  %3340 = vst [vmem:[#allocation16_spill] sm:$0xff] %v2784_v40 }
 0x33f   :  { %1100 = vmatpush1.msra.mxu0 %v2388_v44  ;;  %1171 = vmatpush1.msra.mxu1 %v2462_v9  ;;  %v889_v44 = vld [vmem:[#allocation2 + $0x30] sm:$0xc0] }
 0x340   :  { %1101 = vmatprep.subr.mxu0 %v3318_v4  ;;  %1172 = vmatprep.subr.mxu1 %v3319_v6  ;;  %v2815_v4 = vld [vmem:[#allocation8 + $0x1a0] sm:$0xff]  ;;  %v2818_v6 = vld [vmem:[#allocation8 + $0x1b0] sm:$0xff] }
 0x341   :  { %1102 = vmatpush1.msra.mxu0 %v3320_v10  ;;  %1173 = vmatpush1.msra.mxu1 %v3321_v12  ;;  %v2821_v10 = vld [vmem:[#allocation8 + $0x188] sm:$0xff]  ;;  %v2824_v12 = vld [vmem:[#allocation8 + $0x198] sm:$0xff] }
 0x342   :  { %1103 = vmatprep.subr.mxu0 %v3322_v15  ;;  %1174 = vmatprep.subr.mxu1 %v3323_v17  ;;  %v2827_v15 = vld [vmem:[#allocation8 + $0x180] sm:$0xff]  ;;  %v2830_v17 = vld [vmem:[#allocation8 + $0x190] sm:$0xff] }
 0x343   :  { %1104 = vmatpush1.msra.mxu0 %v3324_v18  ;;  %1175 = vmatpush1.msra.mxu1 %v3325_v20  ;;  %v2833_v18 = vld [vmem:[#allocation8 + $0x168] sm:$0xff]  ;;  %v2836_v20 = vld [vmem:[#allocation8 + $0x178] sm:$0xff] }
 0x344   :  { %1105 = vmatprep.subr.mxu0 %v3326_v23  ;;  %1176 = vmatprep.subr.mxu1 %v3327_v25  ;;  %v2839_v23 = vld [vmem:[#allocation8 + $0x160] sm:$0xff]  ;;  %v2842_v25 = vld [vmem:[#allocation8 + $0x170] sm:$0xff] }
 0x345   :  { %1106 = vmatpush1.msra.mxu0 %v3328_v27  ;;  %1177 = vmatpush1.msra.mxu1 %v3329_v28  ;;  %v2845_v27 = vld [vmem:[#allocation8 + $0x148] sm:$0xff]  ;;  %v2848_v28 = vld [vmem:[#allocation8 + $0x158] sm:$0xff] }
 0x346   :  { %1107 = vmatprep.subr.mxu0 %v3330_v30  ;;  %1178 = vmatprep.subr.mxu1 %v3331_v31  ;;  %v2851_v30 = vld [vmem:[#allocation8 + $0x140] sm:$0xff]  ;;  %v2854_v31 = vld [vmem:[#allocation8 + $0x150] sm:$0xff] }
 0x347   :  { %1108 = vmatpush1.msra.mxu0 %v3332_v32  ;;  %1179 = vmatpush1.msra.mxu1 %v3333_v33  ;;  %v2857_v32 = vld [vmem:[#allocation8 + $0x128] sm:$0xff]  ;;  %v2860_v33 = vld [vmem:[#allocation8 + $0x138] sm:$0xff] }
 0x348   :  { %1109 = vmatprep.subr.mxu0 %v3334_v34  ;;  %1180 = vmatprep.subr.mxu1 %v3335_v35  ;;  %v2863_v34 = vld [vmem:[#allocation8 + $0x120] sm:$0xff]  ;;  %v2866_v35 = vld [vmem:[#allocation8 + $0x130] sm:$0xff] }
 0x349   :  { %1110 = vmatpush1.msra.mxu0 %v3336_v36  ;;  %1143 = vmatprep.mubr.f32.mxu0 %v3337_v37  ;;  %v2869_v36 = vld [vmem:[#allocation8 + $0x108] sm:$0xff] }
 0x34a   :  { %1181 = vmatpush1.msra.mxu1 %v3338_v38  ;;  %1214 = vmatprep.mubr.f32.mxu1 %v3337_v37  ;;  %v2872_v38 = vld [vmem:[#allocation8 + $0x118] sm:$0xff] }
 0x34b   :  { %1247 = vmatprep.subr.mxu0 %v2781_v39  ;;  %1318 = vmatprep.subr.mxu1 %v2784_v40 }
 0x3ea   :  { %v962_v41 = vpop.f32.mrf.mxu0  ;;  %v1033_v42 = vpop.f32.mrf.mxu1 }
 0x3eb   :  { %v1042_v43 = vrot.slane %v962_v41, 2  ;;  %v1044_v63 = vrot.slane %v1033_v42, 2  ;;  %v2875_v41 = vld [vmem:[#allocation8 + $0x100] sm:$0xff]  ;;  %v2878_v42 = vld [vmem:[#allocation8 + $0x110] sm:$0xff] }
 0x3ec   :  { %v964_v45 = vpop.f32.mrf.mxu0  ;;  %v1035_v47 = vpop.f32.mrf.mxu1 }
 0x3ed   :  { %v1050_v49 = vadd.f32 %v1042_v43, %v889_v44  ;;  %v1043_v51 = vrot.slane %v964_v45, 2  ;;  %v1045_v53 = vrot.slane %v1035_v47, 2  ;;  %v1052_v5 = vadd.f32 %v1044_v63, %v891_v3  ;;  %v2881_v43 = vld [vmem:[#allocation8 + $0xe8] sm:$0xff]  ;;  %v2884_v44 = vld [vmem:[#allocation8 + $0xf8] sm:$0xff]  ;;  %v2887_v45 = vld [vmem:[#allocation8 + $0xe0] sm:$0xff] }
 0x3ee   :  { %v2890_v47 = vld [vmem:[#allocation8 + $0xf0] sm:$0xff]  ;;  %v2917_v3 = vld [vmem:[#allocation8 + $0x88] sm:$0xff] }
 0x3ef   :  { %2005 = vtanh.f32 %v1050_v49  ;;  %v1051_v57 = vadd.f32 %v1043_v51, %v890_v55  ;;  %v1053_v61 = vadd.f32 %v1045_v53, %v892_v59  ;;  %v2893_v49 = vld [vmem:[#allocation8 + $0xc8] sm:$0xff]  ;;  %v2896_v51 = vld [vmem:[#allocation8 + $0xd8] sm:$0xff]  ;;  %v2899_v53 = vld [vmem:[#allocation8 + $0xc0] sm:$0xff]  ;;  %3341 = vst [vmem:[#allocation18_spill] sm:$0xff] %v2917_v3 }
 0x3f0   :  { %v2902_v55 = vld [vmem:[#allocation8 + $0xd0] sm:$0xff]  ;;  %v2908_v59 = vld [vmem:[#allocation8 + $0xb8] sm:$0xff] }
 0x3f1   :  { %2007 = vtanh.f32 %v1051_v57  ;;  %v2905_v57 = vld [vmem:[#allocation8 + $0xa8] sm:$0xff]  ;;  %v2914_v63 = vld [vmem:[#allocation8 + $0xb0] sm:$0xff] }
 0x3f2   :  { %2009 = vtanh.f32 %v1053_v61  ;;  %v2911_v61 = vld [vmem:[#allocation8 + $0xa0] sm:$0xff] }
 0x3f3   :  { %2011 = vtanh.f32 %v1052_v5  ;;  %v2920_v5 = vld [vmem:[#allocation8 + $0x98] sm:$0xff] }
 0x3f4   :  { %3342 = vst [vmem:[#allocation19_spill] sm:$0xff] %v2920_v5 }
 0x3fc   :  { %v2006_v7 = vpop.eup %2005 }
 0x3fd   :  { %v1058_v9 = vmul.f32 0.5, %v2006_v7  ;;  %v2923_v7 = vld [vmem:[#allocation8 + $0x80] sm:$0xff] }
 0x3fe   :  { %v2008_v29 = vpop.eup %2007  ;;  %3343 = vst [vmem:[#allocation29_spill] sm:$0xff] %v2923_v7 }
 0x3ff   :  { %v1061_v19 = vadd.f32 0.5, %v1058_v9  ;;  %v1059_v46 = vmul.f32 0.5, %v2008_v29  ;;  %v2010_v8 = vpop.eup %2009  ;;  %v2926_v9 = vld [vmem:[#allocation8 + $0x90] sm:$0xff]  ;;  %v2929_v29 = vld [vmem:[#allocation8 + $0x68] sm:$0xff] }
 0x400   :  { %v2012_v60 = vpop.eup %2011  ;;  %3344 = vst [vmem:[#allocation20_spill] sm:$0xff] %v2926_v9  ;;  %3345 = vst [vmem:[#allocation30_spill] sm:$0xff] %v2929_v29 }
 0x401   :  { %v1062_v11 = vadd.f32 0.5, %v1059_v46  ;;  %v1068_v24 = vmul.f32 %v2010_v8, %v1061_v19  ;;  %v1060_v48 = vmul.f32 0.5, %v2012_v60  ;;  %v2932_v19 = vld [vmem:[#allocation8 + $0x78] sm:$0xff]  ;;  %v2935_v46 = vld [vmem:[#allocation8 + $0x60] sm:$0xff]  ;;  %v2953_v60 = vld [vmem:[#allocation8 + $0x28] sm:$0xff] }
 0x402   :  { %3346 = vst [vmem:[#allocation21_spill] sm:$0xff] %v2932_v19  ;;  %3347 = vst [vmem:[#allocation31_spill] sm:$0xff] %v2935_v46  ;;  %v2944_v8 = vld [vmem:[#allocation8 + $0x58] sm:$0xff] }
 0x403   :  { %v1067_v50 = vmul.f32 %v1065_v0, %v1062_v11  ;;  %v1063_v14 = vadd.f32 0.5, %v1060_v48  ;;  %v2938_v11 = vld [vmem:[#allocation8 + $0x70] sm:$0xff]  ;;  %v2941_v0 = vld [vmem:[#allocation8 + $0x48] sm:$0xff]  ;;  %3350 = vst [vmem:[#allocation23_spill] sm:$0xff] %v2944_v8  ;;  %3353 = vst [vmem:[#allocation34_spill] sm:$0xff] %v2953_v60 }
 0x404   :  { %3348 = vst [vmem:[#allocation22_spill] sm:$0xff] %v2938_v11  ;;  %3349 = vst [vmem:[#allocation32_spill] sm:$0xff] %v2941_v0  ;;  %v2956_v48 = vld [vmem:[#allocation8 + $0x38] sm:$0xff] }
 0x405   :  { %v2788_v2 = vadd.f32 %v1068_v24, %v1067_v50  ;;  %v2947_v50 = vld [vmem:[#allocation8 + $0x40] sm:$0xff]  ;;  %v2950_v24 = vld [vmem:[#allocation8 + $0x50] sm:$0xff]  ;;  %3354 = vst [vmem:[#allocation25_spill] sm:$0xff] %v2956_v48 }
 0x406   :  { %3351 = vst [vmem:[#allocation33_spill] sm:$0xff] %v2947_v50  ;;  %3352 = vst [vmem:[#allocation24_spill] sm:$0xff] %v2950_v24 }
 0x407   :  { %2013 = vtanh.f32 %v2788_v2 }
 0x414   :  { %v2014_v58 = vpop.eup %2013 }
 0x415   :  { %v1071_v56 = vmul.f32 %v2014_v58, %v1063_v14  ;;  %v2959_v14 = vld [vmem:[#allocation8 + $0x20] sm:$0xff]  ;;  %v2962_v58 = vld [vmem:[#allocation8 + $0x30] sm:$0xff] }
 0x416   :  { %3355 = vst [vmem:[#allocation35_spill] sm:$0xff] %v2959_v14  ;;  %3356 = vst [vmem:[#allocation26_spill] sm:$0xff] %v2962_v58 }
 0x417   :  { %v1077_v13 = vrot.slane %v1071_v56, 6  ;;  %v2965_v56 = vld [vmem:[#allocation8 + $0x8] sm:$0xff] }
 0x418   :  { %3357 = vst [vmem:[#allocation36_spill] sm:$0xff] %v2965_v56 }
 0x419   :  { %1144 = vmatmul.mubr.f32.vlgmr.msra.gmra.mxu0 %v1077_v13  ;;  %1215 = vmatmul.mubr.f32.vlgmr.msra.gmra.mxu1 %v1077_v13  ;;  %v2968_v13 = vld [vmem:[#allocation8 + $0x18] sm:$0xff] }
 0x41a   :  { %1248 = vmatpush1.msra.mxu0 %v2791_v54  ;;  %1319 = vmatpush1.msra.mxu1 %v2794_v16  ;;  %3358 = vst [vmem:[#allocation27_spill] sm:$0xff] %v2968_v13 }
 0x41b   :  { %1249 = vmatprep.subr.mxu0 %v2797_v52  ;;  %1320 = vmatprep.subr.mxu1 %v2800_v62 }
 0x41c   :  { %1250 = vmatpush1.msra.mxu0 %v2803_v26  ;;  %1321 = vmatpush1.msra.mxu1 %v2806_v21 }
 0x41d   :  { %1251 = vmatprep.subr.mxu0 %v2809_v22  ;;  %1322 = vmatprep.subr.mxu1 %v2812_v1 }
 0x41e   :  { %1252 = vmatpush1.msra.mxu0 %v2815_v4  ;;  %1323 = vmatpush1.msra.mxu1 %v2818_v6 }
 0x41f   :  { %1253 = vmatprep.subr.mxu0 %v2821_v10  ;;  %1324 = vmatprep.subr.mxu1 %v2824_v12 }
 0x420   :  { %1254 = vmatpush1.msra.mxu0 %v2827_v15  ;;  %1325 = vmatpush1.msra.mxu1 %v2830_v17 }
 0x421   :  { %1255 = vmatprep.subr.mxu0 %v2833_v18  ;;  %1326 = vmatprep.subr.mxu1 %v2836_v20 }
 0x422   :  { %1256 = vmatpush1.msra.mxu0 %v2839_v23  ;;  %1327 = vmatpush1.msra.mxu1 %v2842_v25 }
 0x423   :  { %1257 = vmatprep.subr.mxu0 %v2845_v27  ;;  %1328 = vmatprep.subr.mxu1 %v2848_v28 }
 0x424   :  { %1258 = vmatpush1.msra.mxu0 %v2851_v30  ;;  %1329 = vmatpush1.msra.mxu1 %v2854_v31 }
 0x425   :  { %1259 = vmatprep.subr.mxu0 %v2857_v32  ;;  %1330 = vmatprep.subr.mxu1 %v2860_v33 }
 0x426   :  { %1260 = vmatpush1.msra.mxu0 %v2863_v34  ;;  %1331 = vmatpush1.msra.mxu1 %v2866_v35 }
 0x427   :  { %1261 = vmatprep.subr.mxu0 %v2869_v36  ;;  %1332 = vmatprep.subr.mxu1 %v2872_v38 }
 0x428   :  { %1262 = vmatpush1.msra.mxu0 %v2875_v41  ;;  %1333 = vmatpush1.msra.mxu1 %v2878_v42 }
 0x429   :  { %1263 = vmatprep.subr.mxu0 %v2881_v43  ;;  %1334 = vmatprep.subr.mxu1 %v2884_v44 }
 0x42a   :  { %1264 = vmatpush1.msra.mxu0 %v2887_v45  ;;  %1335 = vmatpush1.msra.mxu1 %v2890_v47 }
 0x42b   :  { %1265 = vmatprep.subr.mxu0 %v2893_v49  ;;  %1336 = vmatprep.subr.mxu1 %v2896_v51 }
 0x42c   :  { %1266 = vmatpush1.msra.mxu0 %v2899_v53  ;;  %1337 = vmatpush1.msra.mxu1 %v2902_v55 }
 0x42d   :  { %1267 = vmatprep.subr.mxu0 %v2905_v57  ;;  %1338 = vmatprep.subr.mxu1 %v2908_v59 }
 0x42e   :  { %1268 = vmatpush1.msra.mxu0 %v2911_v61  ;;  %1339 = vmatpush1.msra.mxu1 %v2914_v63 }
 0x42f   :  { %1269 = vmatprep.subr.mxu0 %v2917_v3  ;;  %1340 = vmatprep.subr.mxu1 %v2920_v5 }
 0x430   :  { %1270 = vmatpush1.msra.mxu0 %v2923_v7  ;;  %1341 = vmatpush1.msra.mxu1 %v2926_v9 }
 0x431   :  { %1271 = vmatprep.subr.mxu0 %v2929_v29  ;;  %1342 = vmatprep.subr.mxu1 %v2932_v19 }
 0x432   :  { %1272 = vmatpush1.msra.mxu0 %v2935_v46  ;;  %1343 = vmatpush1.msra.mxu1 %v2938_v11 }
 0x433   :  { %1273 = vmatprep.subr.mxu0 %v2941_v0  ;;  %1344 = vmatprep.subr.mxu1 %v2944_v8  ;;  %v1075_v0 = vld [vmem:[#allocation2 + $0x38] sm:$0x3] }
 0x434   :  { %1274 = vmatpush1.msra.mxu0 %v2947_v50  ;;  %1345 = vmatpush1.msra.mxu1 %v2950_v24  ;;  %v1073_v24 = vld [vmem:[#allocation2 + $0x20] sm:$0x3] }
 0x435   :  { %1275 = vmatprep.subr.mxu0 %v2953_v60  ;;  %1346 = vmatprep.subr.mxu1 %v2956_v48  ;;  %v2971_v60 = vld [vmem:[#allocation8] sm:$0xff]  ;;  %v2975_v48 = vld [vmem:[#allocation8 + $0x10] sm:$0xff] }
 0x436   :  { %1276 = vmatpush1.msra.mxu0 %v2959_v14  ;;  %1347 = vmatpush1.msra.mxu1 %v2962_v58  ;;  %3359 = vst [vmem:[#allocation37_spill] sm:$0xff] %v2971_v60  ;;  %3360 = vst [vmem:[#allocation28_spill] sm:$0xff] %v2975_v48 }
 0x437   :  { %1277 = vmatprep.subr.mxu0 %v2965_v56  ;;  %1348 = vmatprep.subr.mxu1 %v2968_v13  ;;  %v1072_v56 = vld [vmem:[#allocation2 + $0x8] sm:$0x3] }
 0x438   :  { %1278 = vmatpush1.msra.mxu0 %v2971_v60  ;;  %1311 = vmatprep.mubr.f32.mxu0 %v3337_v37 }
 0x439   :  { %1349 = vmatpush1.msra.mxu1 %v2975_v48  ;;  %1382 = vmatprep.mubr.f32.mxu1 %v3337_v37  ;;  %v1074_v48 = vld [vmem:[#allocation2 + $0x28] sm:$0x3] }
 0x43a   :  { %1430 = vmatprep.subr.mxu0 %v2781_v39  ;;  %1501 = vmatprep.subr.mxu1 %v2784_v40 }
 0x4d9   :  { %v1145_v58 = vpop.f32.mrf.mxu0  ;;  %v1216_v14 = vpop.f32.mrf.mxu1 }
 0x4da   :  { %v1221_v13 = vadd.f32 %v1145_v58, %v1072_v56  ;;  %v1223_v46 = vadd.f32 %v1216_v14, %v1074_v48  ;;  %v1236_v58 = vrot.slane %v2788_v2, 6  ;;  %v3364_v2 = vld [vmem:[#allocation30_spill] sm:$0xff]  ;;  %v3373_v14 = vld [vmem:[#allocation25_spill] sm:$0xff] }
 0x4db   :  { %v1147_v50 = vpop.f32.mrf.mxu0  ;;  %v1218_v8 = vpop.f32.mrf.mxu1  ;;  %v3372_v48 = vld [vmem:[#allocation34_spill] sm:$0xff] }
 0x4dc   :  { %2015 = vtanh.f32 %v1221_v13  ;;  %v1222_v60 = vadd.f32 %v1147_v50, %v1073_v24  ;;  %v1224_v11 = vadd.f32 %v1218_v8, %v1075_v0 }
 0x4de   :  { %2017 = vtanh.f32 %v1222_v60  ;;  %v3371_v60 = vld [vmem:[#allocation24_spill] sm:$0xff] }
 0x4df   :  { %2019 = vtanh.f32 %v1224_v11 }
 0x4e0   :  { %2021 = vtanh.f32 %v1223_v46  ;;  %v3370_v46 = vld [vmem:[#allocation33_spill] sm:$0xff] }
 0x4e9   :  { %v2016_v37 = vpop.eup %2015 }
 0x4ea   :  { %v1229_v19 = vmul.f32 0.5, %v2016_v37  ;;  %v3361_v37 = vld [vmem:[#allocation19_spill] sm:$0xff] }
 0x4eb   :  { %v2018_v39 = vpop.eup %2017 }
 0x4ec   :  { %v1232_v29 = vadd.f32 0.5, %v1229_v19  ;;  %v1230_v40 = vmul.f32 0.5, %v2018_v39  ;;  %v2020_v56 = vpop.eup %2019  ;;  %v3362_v39 = vld [vmem:[#allocation29_spill] sm:$0xff]  ;;  %v3369_v19 = vld [vmem:[#allocation23_spill] sm:$0xff] }
 0x4ed   :  { %v2022_v0 = vpop.eup %2021 }
 0x4ee   :  { %v1233_v9 = vadd.f32 0.5, %v1230_v40  ;;  %v1239_v5 = vmul.f32 %v2020_v56, %v1232_v29  ;;  %v1231_v11 = vmul.f32 0.5, %v2022_v0  ;;  %v3363_v40 = vld [vmem:[#allocation20_spill] sm:$0xff]  ;;  %v3375_v56 = vld [vmem:[#allocation26_spill] sm:$0xff] }
 0x4ef   :  { %v3368_v29 = vld [vmem:[#allocation32_spill] sm:$0xff] }
 0x4f0   :  { %v1238_v7 = vmul.f32 %v1236_v58, %v1233_v9  ;;  %v1234_v8 = vadd.f32 0.5, %v1231_v11  ;;  %v3367_v9 = vld [vmem:[#allocation22_spill] sm:$0xff]  ;;  %v3374_v58 = vld [vmem:[#allocation35_spill] sm:$0xff]  ;;  %v3376_v0 = vld [vmem:[#allocation36_spill] sm:$0xff] }
 0x4f1   :  { %v3377_v11 = vld [vmem:[#allocation27_spill] sm:$0xff] }
 0x4f2   :  { %v2982_v13 = vadd.f32 %v1239_v5, %v1238_v7  ;;  %v3365_v5 = vld [vmem:[#allocation21_spill] sm:$0xff]  ;;  %v3366_v7 = vld [vmem:[#allocation31_spill] sm:$0xff] }
 0x4f4   :  { %2023 = vtanh.f32 %v2982_v13 }
 0x501   :  { %v2024_v50 = vpop.eup %2023 }
 0x502   :  { %v1242_v24 = vmul.f32 %v2024_v50, %v1234_v8  ;;  %v3378_v8 = vld [vmem:[#allocation37_spill] sm:$0xff]  ;;  %v3379_v50 = vmov 0.0  }
 0x504   :  { %1312 = vmatmul.mubr.f32.vlgmr.msra.gmra.mxu0 %v1242_v24  ;;  %1383 = vmatmul.mubr.f32.vlgmr.msra.gmra.mxu1 %v1242_v24  ;;  %v3380_v24 = vld [vmem:[#allocation28_spill] sm:$0xff] }
 0x505   :  { %1431 = vmatpush1.msra.mxu0 %v2791_v54  ;;  %1502 = vmatpush1.msra.mxu1 %v2794_v16 }
 0x506   :  { %1432 = vmatprep.subr.mxu0 %v2797_v52  ;;  %1503 = vmatprep.subr.mxu1 %v2800_v62 }
 0x507   :  { %1433 = vmatpush1.msra.mxu0 %v2803_v26  ;;  %1504 = vmatpush1.msra.mxu1 %v2806_v21 }
 0x508   :  { %1434 = vmatprep.subr.mxu0 %v2809_v22  ;;  %1505 = vmatprep.subr.mxu1 %v2812_v1 }
 0x509   :  { %1435 = vmatpush1.msra.mxu0 %v2815_v4  ;;  %1506 = vmatpush1.msra.mxu1 %v2818_v6 }
 0x50a   :  { %1436 = vmatprep.subr.mxu0 %v2821_v10  ;;  %1507 = vmatprep.subr.mxu1 %v2824_v12 }
 0x50b   :  { %1437 = vmatpush1.msra.mxu0 %v2827_v15  ;;  %1508 = vmatpush1.msra.mxu1 %v2830_v17 }
 0x50c   :  { %1438 = vmatprep.subr.mxu0 %v2833_v18  ;;  %1509 = vmatprep.subr.mxu1 %v2836_v20 }
 0x50d   :  { %1439 = vmatpush1.msra.mxu0 %v2839_v23  ;;  %1510 = vmatpush1.msra.mxu1 %v2842_v25 }
 0x50e   :  { %1440 = vmatprep.subr.mxu0 %v2845_v27  ;;  %1511 = vmatprep.subr.mxu1 %v2848_v28 }
 0x50f   :  { %1441 = vmatpush1.msra.mxu0 %v2851_v30  ;;  %1512 = vmatpush1.msra.mxu1 %v2854_v31 }
 0x510   :  { %1442 = vmatprep.subr.mxu0 %v2857_v32  ;;  %1513 = vmatprep.subr.mxu1 %v2860_v33 }
 0x511   :  { %1443 = vmatpush1.msra.mxu0 %v2863_v34  ;;  %1514 = vmatpush1.msra.mxu1 %v2866_v35 }
 0x512   :  { %1444 = vmatprep.subr.mxu0 %v2869_v36  ;;  %1515 = vmatprep.subr.mxu1 %v2872_v38 }
 0x513   :  { %1445 = vmatpush1.msra.mxu0 %v2875_v41  ;;  %1516 = vmatpush1.msra.mxu1 %v2878_v42 }
 0x514   :  { %1446 = vmatprep.subr.mxu0 %v2881_v43  ;;  %1517 = vmatprep.subr.mxu1 %v2884_v44 }
 0x515   :  { %1447 = vmatpush1.msra.mxu0 %v2887_v45  ;;  %1518 = vmatpush1.msra.mxu1 %v2890_v47 }
 0x516   :  { %1448 = vmatprep.subr.mxu0 %v2893_v49  ;;  %1519 = vmatprep.subr.mxu1 %v2896_v51 }
 0x517   :  { %1449 = vmatpush1.msra.mxu0 %v2899_v53  ;;  %1520 = vmatpush1.msra.mxu1 %v2902_v55 }
 0x518   :  { %1450 = vmatprep.subr.mxu0 %v2905_v57  ;;  %1521 = vmatprep.subr.mxu1 %v2908_v59 }
 0x519   :  { %1451 = vmatpush1.msra.mxu0 %v2911_v61  ;;  %1522 = vmatpush1.msra.mxu1 %v2914_v63 }
 0x51a   :  { %1452 = vmatprep.subr.mxu0 %v2917_v3  ;;  %1523 = vmatprep.subr.mxu1 %v3361_v37 }
 0x51b   :  { %1453 = vmatpush1.msra.mxu0 %v3362_v39  ;;  %1524 = vmatpush1.msra.mxu1 %v3363_v40 }
 0x51c   :  { %1454 = vmatprep.subr.mxu0 %v3364_v2  ;;  %1525 = vmatprep.subr.mxu1 %v3365_v5  ;;  %v1246_v5 = vld [vmem:[#allocation2 + $0x38] sm:$0xc] }
 0x51d   :  { %1455 = vmatpush1.msra.mxu0 %v3366_v7  ;;  %1526 = vmatpush1.msra.mxu1 %v3367_v9 }
 0x51e   :  { %1456 = vmatprep.subr.mxu0 %v3368_v29  ;;  %1527 = vmatprep.subr.mxu1 %v3369_v19 }
 0x51f   :  { %1457 = vmatpush1.msra.mxu0 %v3370_v46  ;;  %1528 = vmatpush1.msra.mxu1 %v3371_v60  ;;  %v3381_v60 = vld [vmem:[#allocation17_spill] sm:$0xff] }
 0x520   :  { %1458 = vmatprep.subr.mxu0 %v3372_v48  ;;  %1529 = vmatprep.subr.mxu1 %v3373_v14  ;;  %v3382_v48 = vld [vmem:[#allocation16_spill] sm:$0xff] }
 0x521   :  { %1459 = vmatpush1.msra.mxu0 %v3374_v58  ;;  %1530 = vmatpush1.msra.mxu1 %v3375_v56  ;;  %v1243_v56 = vld [vmem:[#allocation2 + $0x8] sm:$0xc] }
 0x522   :  { %1460 = vmatprep.subr.mxu0 %v3376_v0  ;;  %1531 = vmatprep.subr.mxu1 %v3377_v11 }
 0x523   :  { %1461 = vmatpush1.msra.mxu0 %v3378_v8  ;;  %1494 = vmatprep.mubr.f32.mxu0 %v3379_v50  ;;  %v1244_v8 = vld [vmem:[#allocation2 + $0x20] sm:$0xc] }
 0x524   :  { %1532 = vmatpush1.msra.mxu1 %v3380_v24  ;;  %1565 = vmatprep.mubr.f32.mxu1 %v3379_v50 }
 0x525   :  { %1613 = vmatprep.subr.mxu0 %v3381_v60  ;;  %1684 = vmatprep.subr.mxu1 %v3382_v48  ;;  %v1245_v60 = vld [vmem:[#allocation2 + $0x28] sm:$0xc] }
 0x5c4   :  { %v1313_v14 = vpop.f32.mrf.mxu0  ;;  %v1384_v58 = vpop.f32.mrf.mxu1 }
 0x5c5   :  { %v1393_v46 = vrot.slane %v1313_v14, 6  ;;  %v1395_v50 = vrot.slane %v1384_v58, 6 }
 0x5c6   :  { %v1315_v19 = vpop.f32.mrf.mxu0  ;;  %v1386_v0 = vpop.f32.mrf.mxu1 }
 0x5c7   :  { %v1401_v29 = vadd.f32 %v1393_v46, %v1243_v56  ;;  %v1394_v11 = vrot.slane %v1315_v19, 6  ;;  %v1396_v9 = vrot.slane %v1386_v0, 6  ;;  %v1403_v2 = vadd.f32 %v1395_v50, %v1245_v60 }
 0x5c8   :  { %v1416_v19 = vrot.slane %v2982_v13, 6 }
 0x5c9   :  { %2025 = vtanh.f32 %v1401_v29  ;;  %v1402_v7 = vadd.f32 %v1394_v11, %v1244_v8  ;;  %v1404_v24 = vadd.f32 %v1396_v9, %v1246_v5 }
 0x5cb   :  { %2027 = vtanh.f32 %v1402_v7 }
 0x5cc   :  { %2029 = vtanh.f32 %v1404_v24 }
 0x5cd   :  { %2031 = vtanh.f32 %v1403_v2 }
 0x5d6   :  { %v2026_v48 = vpop.eup %2025 }
 0x5d7   :  { %v1409_v40 = vmul.f32 0.5, %v2026_v48 }
 0x5d8   :  { %v2028_v39 = vpop.eup %2027 }
 0x5d9   :  { %v1412_v14 = vadd.f32 0.5, %v1409_v40  ;;  %v1410_v37 = vmul.f32 0.5, %v2028_v39  ;;  %v2030_v46 = vpop.eup %2029 }
 0x5da   :  { %v2032_v5 = vpop.eup %2031 }
 0x5db   :  { %v1413_v3 = vadd.f32 0.5, %v1410_v37  ;;  %v1419_v29 = vmul.f32 %v2030_v46, %v1412_v14  ;;  %v1411_v7 = vmul.f32 0.5, %v2032_v5  ;;  %v1804_v46 = vld [vmem:[#allocation9 + $0x78] sm:$0xff] }
 0x5dc   :  { %v1800_v5 = vld [vmem:[#allocation9 + $0x58] sm:$0xff] }
 0x5dd   :  { %v1418_v56 = vmul.f32 %v1416_v19, %v1413_v3  ;;  %v1414_v9 = vadd.f32 0.5, %v1411_v7  ;;  %v1799_v7 = vld [vmem:[#allocation9 + $0x50] sm:$0xff] }
 0x5df   :  { %v3052_v0 = vadd.f32 %v1419_v29, %v1418_v56  ;;  %v1803_v56 = vld [vmem:[#allocation9 + $0x70] sm:$0xff]  ;;  %v1802_v29 = vld [vmem:[#allocation9 + $0x68] sm:$0xff] }
 0x5e1   :  { %2033 = vtanh.f32 %v3052_v0  ;;  %v1599_v13 = vrot.slane %v3052_v0, 6  ;;  %v1801_v0 = vld [vmem:[#allocation9 + $0x60] sm:$0xff] }
 0x5ee   :  { %v2034_v58 = vpop.eup %2033 }
 0x5ef   :  { %v1422_v11 = vmul.f32 %v2034_v58, %v1414_v9  ;;  %v1798_v9 = vld [vmem:[#allocation9 + $0x48] sm:$0xff]  ;;  %v1797_v58 = vld [vmem:[#allocation9 + $0x40] sm:$0xff] }
 0x5f1   :  { %v1428_v8 = vrot.slane %v1422_v11, 2  ;;  %v1796_v11 = vld [vmem:[#allocation9 + $0x38] sm:$0xff] }
 0x5f3   :  { %1495 = vmatmul.mubr.f32.vlgmr.msra.gmra.mxu0 %v1428_v8  ;;  %1566 = vmatmul.mubr.f32.vlgmr.msra.gmra.mxu1 %v1428_v8  ;;  %v1795_v8 = vld [vmem:[#allocation9 + $0x30] sm:$0xff] }
 0x5f4   :  { %1614 = vmatpush1.msra.mxu0 %v2791_v54  ;;  %1685 = vmatpush1.msra.mxu1 %v2794_v16  ;;  %v3383_v54 = vld [vmem:[#allocation18_spill] sm:$0xff]  ;;  %v3384_v16 = vld [vmem:[#allocation19_spill] sm:$0xff] }
 0x5f5   :  { %1615 = vmatprep.subr.mxu0 %v2797_v52  ;;  %1686 = vmatprep.subr.mxu1 %v2800_v62  ;;  %v3385_v52 = vld [vmem:[#allocation29_spill] sm:$0xff]  ;;  %v3386_v62 = vld [vmem:[#allocation20_spill] sm:$0xff] }
 0x5f6   :  { %1616 = vmatpush1.msra.mxu0 %v2803_v26  ;;  %1687 = vmatpush1.msra.mxu1 %v2806_v21  ;;  %v3387_v26 = vld [vmem:[#allocation30_spill] sm:$0xff]  ;;  %v3388_v21 = vld [vmem:[#allocation21_spill] sm:$0xff] }
 0x5f7   :  { %1617 = vmatprep.subr.mxu0 %v2809_v22  ;;  %1688 = vmatprep.subr.mxu1 %v2812_v1  ;;  %v3389_v22 = vld [vmem:[#allocation31_spill] sm:$0xff]  ;;  %v3390_v1 = vld [vmem:[#allocation22_spill] sm:$0xff] }
 0x5f8   :  { %1618 = vmatpush1.msra.mxu0 %v2815_v4  ;;  %1689 = vmatpush1.msra.mxu1 %v2818_v6  ;;  %v3391_v4 = vld [vmem:[#allocation32_spill] sm:$0xff]  ;;  %v3392_v6 = vld [vmem:[#allocation23_spill] sm:$0xff] }
 0x5f9   :  { %1619 = vmatprep.subr.mxu0 %v2821_v10  ;;  %1690 = vmatprep.subr.mxu1 %v2824_v12  ;;  %v3393_v10 = vld [vmem:[#allocation33_spill] sm:$0xff]  ;;  %v3394_v12 = vld [vmem:[#allocation24_spill] sm:$0xff] }
 0x5fa   :  { %1620 = vmatpush1.msra.mxu0 %v2827_v15  ;;  %1691 = vmatpush1.msra.mxu1 %v2830_v17  ;;  %v3395_v15 = vld [vmem:[#allocation34_spill] sm:$0xff]  ;;  %v3396_v17 = vld [vmem:[#allocation25_spill] sm:$0xff] }
 0x5fb   :  { %1621 = vmatprep.subr.mxu0 %v2833_v18  ;;  %1692 = vmatprep.subr.mxu1 %v2836_v20  ;;  %v3397_v18 = vld [vmem:[#allocation35_spill] sm:$0xff]  ;;  %v3398_v20 = vld [vmem:[#allocation26_spill] sm:$0xff] }
 0x5fc   :  { %1622 = vmatpush1.msra.mxu0 %v2839_v23  ;;  %1693 = vmatpush1.msra.mxu1 %v2842_v25  ;;  %v3399_v23 = vld [vmem:[#allocation36_spill] sm:$0xff]  ;;  %v3400_v25 = vld [vmem:[#allocation27_spill] sm:$0xff] }
 0x5fd   :  { %1623 = vmatprep.subr.mxu0 %v2845_v27  ;;  %1694 = vmatprep.subr.mxu1 %v2848_v28  ;;  %v3401_v27 = vld [vmem:[#allocation37_spill] sm:$0xff]  ;;  %v3402_v28 = vmov 0.0  }
 0x5fe   :  { %1624 = vmatpush1.msra.mxu0 %v2851_v30  ;;  %1695 = vmatpush1.msra.mxu1 %v2854_v31  ;;  %v3403_v30 = vld [vmem:[#allocation28_spill] sm:$0xff] }
 0x5ff   :  { %1625 = vmatprep.subr.mxu0 %v2857_v32  ;;  %1696 = vmatprep.subr.mxu1 %v2860_v33 }
 0x600   :  { %1626 = vmatpush1.msra.mxu0 %v2863_v34  ;;  %1697 = vmatpush1.msra.mxu1 %v2866_v35  ;;  %v1423_v34 = vld [vmem:[#allocation2 + $0x8] sm:$0x30] }
 0x601   :  { %1627 = vmatprep.subr.mxu0 %v2869_v36  ;;  %1698 = vmatprep.subr.mxu1 %v2872_v38 }
 0x602   :  { %1628 = vmatpush1.msra.mxu0 %v2875_v41  ;;  %1699 = vmatpush1.msra.mxu1 %v2878_v42 }
 0x603   :  { %1629 = vmatprep.subr.mxu0 %v2881_v43  ;;  %1700 = vmatprep.subr.mxu1 %v2884_v44  ;;  %v1424_v43 = vld [vmem:[#allocation2 + $0x20] sm:$0x30] }
 0x604   :  { %1630 = vmatpush1.msra.mxu0 %v2887_v45  ;;  %1701 = vmatpush1.msra.mxu1 %v2890_v47  ;;  %v1426_v45 = vld [vmem:[#allocation2 + $0x38] sm:$0x30] }
 0x605   :  { %1631 = vmatprep.subr.mxu0 %v2893_v49  ;;  %1702 = vmatprep.subr.mxu1 %v2896_v51  ;;  %v1425_v51 = vld [vmem:[#allocation2 + $0x28] sm:$0x30] }
 0x606   :  { %1632 = vmatpush1.msra.mxu0 %v2899_v53  ;;  %1703 = vmatpush1.msra.mxu1 %v2902_v55 }
 0x607   :  { %1633 = vmatprep.subr.mxu0 %v2905_v57  ;;  %1704 = vmatprep.subr.mxu1 %v2908_v59 }
 0x608   :  { %1634 = vmatpush1.msra.mxu0 %v2911_v61  ;;  %1705 = vmatpush1.msra.mxu1 %v2914_v63 }
 0x609   :  { %1635 = vmatprep.subr.mxu0 %v3383_v54  ;;  %1706 = vmatprep.subr.mxu1 %v3384_v16  ;;  %v1794_v54 = vld [vmem:[#allocation9 + $0x28] sm:$0xff]  ;;  %v1793_v16 = vld [vmem:[#allocation9 + $0x20] sm:$0xff] }
 0x60a   :  { %1636 = vmatpush1.msra.mxu0 %v3385_v52  ;;  %1707 = vmatpush1.msra.mxu1 %v3386_v62  ;;  %v1792_v52 = vld [vmem:[#allocation9 + $0x18] sm:$0xff]  ;;  %v1791_v62 = vld [vmem:[#allocation9 + $0x10] sm:$0xff] }
 0x60b   :  { %1637 = vmatprep.subr.mxu0 %v3387_v26  ;;  %1708 = vmatprep.subr.mxu1 %v3388_v21  ;;  %v1790_v26 = vld [vmem:[#allocation9 + $0x8] sm:$0xff]  ;;  %v1789_v21 = vld [vmem:[#allocation9] sm:$0xff] }
 0x60c   :  { %1638 = vmatpush1.msra.mxu0 %v3389_v22  ;;  %1709 = vmatpush1.msra.mxu1 %v3390_v1 }
 0x60d   :  { %1639 = vmatprep.subr.mxu0 %v3391_v4  ;;  %1710 = vmatprep.subr.mxu1 %v3392_v6  ;;  %v1606_v6 = vld [vmem:[#allocation2 + $0x8] sm:$0xc0] }
 0x60e   :  { %1640 = vmatpush1.msra.mxu0 %v3393_v10  ;;  %1711 = vmatpush1.msra.mxu1 %v3394_v12 }
 0x60f   :  { %1641 = vmatprep.subr.mxu0 %v3395_v15  ;;  %1712 = vmatprep.subr.mxu1 %v3396_v17 }
 0x610   :  { %1642 = vmatpush1.msra.mxu0 %v3397_v18  ;;  %1713 = vmatpush1.msra.mxu1 %v3398_v20  ;;  %v1607_v20 = vld [vmem:[#allocation2 + $0x20] sm:$0xc0] }
 0x611   :  { %1643 = vmatprep.subr.mxu0 %v3399_v23  ;;  %1714 = vmatprep.subr.mxu1 %v3400_v25  ;;  %v1609_v25 = vld [vmem:[#allocation2 + $0x38] sm:$0xc0] }
 0x612   :  { %1644 = vmatpush1.msra.mxu0 %v3401_v27  ;;  %1677 = vmatprep.mubr.f32.mxu0 %v3402_v28 }
 0x613   :  { %1715 = vmatpush1.msra.mxu1 %v3403_v30  ;;  %1748 = vmatprep.mubr.f32.mxu1 %v3402_v28 }
 0x614   :  { %1929 = vmatprep.subr.mxu0 %v3402_v28 }
 0x6b3   :  { %v1496_v31 = vpop.f32.mrf.mxu0  ;;  %v1567_v32 = vpop.f32.mrf.mxu1 }
 0x6b4   :  { %v1576_v33 = vrot.slane %v1496_v31, 4  ;;  %v1578_v49 = vrot.slane %v1567_v32, 4  ;;  %v1608_v31 = vld [vmem:[#allocation2 + $0x28] sm:$0xc0] }
 0x6b5   :  { %v1498_v35 = vpop.f32.mrf.mxu0  ;;  %v1569_v36 = vpop.f32.mrf.mxu1 }
 0x6b6   :  { %v1584_v38 = vadd.f32 %v1576_v33, %v1423_v34  ;;  %v1577_v41 = vrot.slane %v1498_v35, 4  ;;  %v1579_v42 = vrot.slane %v1569_v36, 4  ;;  %v1586_v53 = vadd.f32 %v1578_v49, %v1425_v51 }
 0x6b8   :  { %2035 = vtanh.f32 %v1584_v38  ;;  %v1585_v44 = vadd.f32 %v1577_v41, %v1424_v43  ;;  %v1587_v47 = vadd.f32 %v1579_v42, %v1426_v45 }
 0x6ba   :  { %2037 = vtanh.f32 %v1585_v44 }
 0x6bb   :  { %2039 = vtanh.f32 %v1587_v47 }
 0x6bc   :  { %2041 = vtanh.f32 %v1586_v53 }
 0x6c5   :  { %v2036_v55 = vpop.eup %2035 }
 0x6c6   :  { %v1592_v57 = vmul.f32 0.5, %v2036_v55 }
 0x6c7   :  { %v2038_v59 = vpop.eup %2037 }
 0x6c8   :  { %v1595_v61 = vadd.f32 0.5, %v1592_v57  ;;  %v1593_v63 = vmul.f32 0.5, %v2038_v59  ;;  %v2040_v37 = vpop.eup %2039  ;;  %v1911_v59 = vld [vmem:[%s3152_s5] ss:$0 sm:$0xff] }
 0x6c9   :  { %v2042_v50 = vpop.eup %2041 }
 0x6ca   :  { %v1596_v3 = vadd.f32 0.5, %v1593_v63  ;;  %v1602_v40 = vmul.f32 %v2040_v37, %v1595_v61  ;;  %v1594_v24 = vmul.f32 0.5, %v2042_v50 }
 0x6cc   :  { %v1601_v39 = vmul.f32 %v1599_v13, %v1596_v3  ;;  %v1597_v60 = vadd.f32 0.5, %v1594_v24 }
 0x6ce   :  { %v3121_v2 = vadd.f32 %v1602_v40, %v1601_v39 }
 0x6d0   :  { %2043 = vtanh.f32 %v3121_v2  ;;  %v1782_v41 = vrot.slane %v3121_v2, 6 }
 0x6dd   :  { %v2044_v48 = vpop.eup %2043 }
 0x6de   :  { %v1605_v14 = vmul.f32 %v2044_v48, %v1597_v60 }
 0x6e0   :  { %v1611_v19 = vrot.slane %v1605_v14, 4 }
 0x6e2   :  { %1678 = vmatmul.mubr.f32.vlgmr.msra.gmra.mxu0 %v1611_v19  ;;  %1749 = vmatmul.mubr.f32.vlgmr.msra.gmra.mxu1 %v1611_v19 }
 0x6e3   :  { %1930 = vmatpush3.msra.mxu0 %v1804_v46  ;;  %1961 = vmatprep.mubr.msk.f32.mxu0 %vm2236_vm2, %v3402_v28 }
 0x6e4   :  { %1931 = vmatprep.subr.mxu0 %v3402_v28 }
 0x6e5   :  { %1932 = vmatpush3.msra.mxu0 %v1803_v56 }
 0x6e6   :  { %1933 = vmatprep.subr.mxu0 %v3402_v28 }
 0x6e7   :  { %1934 = vmatpush3.msra.mxu0 %v1802_v29 }
 0x6e8   :  { %1935 = vmatprep.subr.mxu0 %v3402_v28 }
 0x6e9   :  { %1936 = vmatpush3.msra.mxu0 %v1801_v0 }
 0x6ea   :  { %1937 = vmatprep.subr.mxu0 %v3402_v28 }
 0x6eb   :  { %1938 = vmatpush3.msra.mxu0 %v1800_v5 }
 0x6ec   :  { %1939 = vmatprep.subr.mxu0 %v3402_v28 }
 0x6ed   :  { %1940 = vmatpush3.msra.mxu0 %v1799_v7 }
 0x6ee   :  { %1941 = vmatprep.subr.mxu0 %v3402_v28 }
 0x6ef   :  { %1942 = vmatpush3.msra.mxu0 %v1798_v9 }
 0x6f0   :  { %1943 = vmatprep.subr.mxu0 %v3402_v28 }
 0x6f1   :  { %1944 = vmatpush3.msra.mxu0 %v1797_v58 }
 0x6f2   :  { %1945 = vmatprep.subr.mxu0 %v3402_v28 }
 0x6f3   :  { %1946 = vmatpush3.msra.mxu0 %v1796_v11 }
 0x6f4   :  { %1947 = vmatprep.subr.mxu0 %v3402_v28 }
 0x6f5   :  { %1948 = vmatpush3.msra.mxu0 %v1795_v8 }
 0x6f6   :  { %1949 = vmatprep.subr.mxu0 %v3402_v28 }
 0x6f7   :  { %1950 = vmatpush3.msra.mxu0 %v1794_v54 }
 0x6f8   :  { %1951 = vmatprep.subr.mxu0 %v3402_v28 }
 0x6f9   :  { %1952 = vmatpush3.msra.mxu0 %v1793_v16 }
 0x6fa   :  { %1953 = vmatprep.subr.mxu0 %v3402_v28 }
 0x6fb   :  { %1954 = vmatpush3.msra.mxu0 %v1792_v52 }
 0x6fc   :  { %1955 = vmatprep.subr.mxu0 %v3402_v28 }
 0x6fd   :  { %1956 = vmatpush3.msra.mxu0 %v1791_v62 }
 0x6fe   :  { %1957 = vmatprep.subr.mxu0 %v3402_v28 }
 0x6ff   :  { %1958 = vmatpush3.msra.mxu0 %v1790_v26 }
 0x700   :  { %1959 = vmatprep.subr.mxu0 %v3402_v28 }
 0x701   :  { %1960 = vmatpush3.msra.mxu0 %v1789_v21 }
 0x7a2   :  { %v1679_v22 = vpop.f32.mrf.mxu0  ;;  %v1750_v1 = vpop.f32.mrf.mxu1 }
 0x7a3   :  { %v1759_v4 = vrot.slane %v1679_v22, 2  ;;  %v1761_v30 = vrot.slane %v1750_v1, 2 }
 0x7a4   :  { %v1681_v10 = vpop.f32.mrf.mxu0  ;;  %v1752_v12 = vpop.f32.mrf.mxu1 }
 0x7a5   :  { %v1767_v15 = vadd.f32 %v1759_v4, %v1606_v6  ;;  %v1760_v17 = vrot.slane %v1681_v10, 2  ;;  %v1762_v18 = vrot.slane %v1752_v12, 2  ;;  %v1769_v28 = vadd.f32 %v1761_v30, %v1608_v31 }
 0x7a7   :  { %2045 = vtanh.f32 %v1767_v15  ;;  %v1768_v23 = vadd.f32 %v1760_v17, %v1607_v20  ;;  %v1770_v27 = vadd.f32 %v1762_v18, %v1609_v25 }
 0x7a9   :  { %2047 = vtanh.f32 %v1768_v23 }
 0x7aa   :  { %2049 = vtanh.f32 %v1770_v27 }
 0x7ab   :  { %2051 = vtanh.f32 %v1769_v28 }
 0x7b4   :  { %v2046_v32 = vpop.eup %2045 }
 0x7b5   :  { %v1775_v33 = vmul.f32 0.5, %v2046_v32 }
 0x7b6   :  { %v2048_v34 = vpop.eup %2047 }
 0x7b7   :  { %v1778_v35 = vadd.f32 0.5, %v1775_v33  ;;  %v1776_v36 = vmul.f32 0.5, %v2048_v34  ;;  %v2050_v42 = vpop.eup %2049 }
 0x7b8   :  { %v2052_v47 = vpop.eup %2051 }
 0x7b9   :  { %v1779_v38 = vadd.f32 0.5, %v1776_v36  ;;  %v1785_v44 = vmul.f32 %v2050_v42, %v1778_v35  ;;  %v1777_v49 = vmul.f32 0.5, %v2052_v47 }
 0x7bb   :  { %v1784_v43 = vmul.f32 %v1782_v41, %v1779_v38  ;;  %v1780_v51 = vadd.f32 0.5, %v1777_v49 }
 0x7bd   :  { %v1786_v45 = vadd.f32 %v1785_v44, %v1784_v43 }
 0x7bf   :  { %2053 = vtanh.f32 %v1786_v45 }
 0x7cc   :  { %v2054_v53 = vpop.eup %2053 }
 0x7cd   :  { %v1788_v55 = vmul.f32 %v2054_v53, %v1780_v51 }
 0x7cf   :  { %v1813_v57 = vrot.slane %v1788_v55, 6 }
 0x7d1   :  { %1962 = vmatmul.mubr.f32.vlgmr.msra.gmra.mxu0 %v1813_v57 }
 0x891   :  { %v1881_v61 = vpop.f32.mrf.mxu0 }
 0x892   :  { %v1882_v63 = vadd.f32 %v1911_v59, %v1881_v61 }
 0x893   :  { %v1963_v3 = vpop.f32.mrf.mxu0 }
 0x894   :  { %1885 = vst [vmem:[#allocation11] sm:$0x3] %v1882_v63 }
 0x895   :  { %2210 = shalt.err (!%p2207_p10)
}
 0x896   :  { %1895 = dma.vmem_to_hbm [thread:$0]  %s1893_s21, 32, %s3153_s6, [#allocation5]  }
 0x897   :  { %2225 = dma.done.wait [#allocation5], 32  }
 0x898   :  { %2226 = vsyncadd [#allocation5], 4294967264 }
 0x899   :  { %1899 = vsyncpa [#allocation4], 1 }
 0x89a   :  { %1900 = vsyncpa [#allocation7], 1 }
 0x89b   :  { %1901 = vsyncpa [#allocation10], 1 }
 0x89c   :  { %1902 = vsyncpa [#allocation5], 1 }

</bundles_post_ra>
